<compile_context>
chip_gen: v7x
topology: tpu7x:2x2x1
jax: 0.10.0
libtpu: 0.0.40
codegen_flags: <defaults>
</compile_context>

<pallas_src>
import functools
import math

import jax
import jax.numpy as jnp
from jax.experimental import pallas as pl
from jax.experimental.pallas import tpu as pltpu


# ---------------------------------------------------------------------------
# Kernel: ONE encoder layer of one group's stack over one batch tile.
# Grid = (group, batch_tile, layer); layer is innermost / "arbitrary".
# ---------------------------------------------------------------------------
def _layer_kernel(
    x_ref,                 # (B_tile, L, E) input (read only at layer == 0)
    wqkv_ref, bqkv_ref,    # (E, 3E) bf16, (1, 3E) f32
    wo_ref, bo_ref,        # (E, E)  bf16, (1, E)  f32
    g1_ref, be1_ref,       # (1, E) f32  -- LayerNorm 1
    w1_ref, b1_ref,        # (E, H) bf16, (1, H) f32
    w2_ref, b2_ref,        # (H, E) bf16, (1, E) f32
    g2_ref, be2_ref,       # (1, E) f32  -- LayerNorm 2
    o_ref,                 # (B_tile, L, E) output (written at last layer)
    carry_ref,             # (B_tile*L, E) f32 scratch: residual stream carry
    *, nhead, head_dim,
):
    layer = pl.program_id(2)
    b_tile, seq, emb = x_ref.shape
    n_rows = b_tile * seq

    @pl.when(layer == 0)
    def _():
        carry_ref[...] = x_ref[...].astype(jnp.float32).reshape(n_rows, emb)

    def layer_norm(v, g, b):
        mu = jnp.mean(v, axis=-1, keepdims=True)
        var = jnp.mean((v - mu) ** 2, axis=-1, keepdims=True)
        return (v - mu) * jax.lax.rsqrt(var + 1e-5) * g + b

    x32 = carry_ref[...]                          # (n_rows, E) f32
    xb = x32.astype(jnp.bfloat16)

    # Fused QKV projection: single wide matmul over all rows of the tile.
    qkv = jnp.dot(xb, wqkv_ref[...], preferred_element_type=jnp.float32)
    qkv = qkv + bqkv_ref[...]                     # (n_rows, 3E) f32

    q = qkv[:, :emb].reshape(b_tile, seq, emb)    # 1/sqrt(hd) pre-folded in Wq
    k = qkv[:, emb:2 * emb].reshape(b_tile, seq, emb)
    v = qkv[:, 2 * emb:].reshape(b_tile, seq, emb)

    ctx_heads = []
    for h in range(nhead):                        # static unroll, static slices
        lo = h * head_dim
        hi = lo + head_dim
        qh = q[:, :, lo:hi].astype(jnp.bfloat16)  # (B_tile, L, hd)
        kh = k[:, :, lo:hi].astype(jnp.bfloat16)
        vh = v[:, :, lo:hi].astype(jnp.bfloat16)

        s = jnp.einsum("bqd,bkd->bqk", qh, kh,
                       preferred_element_type=jnp.float32)   # (B_tile, L, L)
        s = s - jnp.max(s, axis=-1, keepdims=True)
        p = jnp.exp(s)
        inv = pl.reciprocal(jnp.sum(p, axis=-1, keepdims=True), approx=True)
        p = p * inv

        ctx_heads.append(
            jnp.einsum("bqk,bkd->bqd", p.astype(jnp.bfloat16), vh,
                       preferred_element_type=jnp.float32))  # (B_tile, L, hd)

    # Concat heads once, then a single full-contraction Wo matmul (fills the
    # MXU depth instead of nhead shallow head_dim contractions).
    ctx = jnp.concatenate(ctx_heads, axis=-1).reshape(n_rows, emb)
    attn = jnp.dot(ctx.astype(jnp.bfloat16), wo_ref[...],
                   preferred_element_type=jnp.float32) + bo_ref[...]

    # Residual + LayerNorm 1 (post-LN), f32.
    y = layer_norm(x32 + attn, g1_ref[...], be1_ref[...])

    # Feed-forward (Linear -> ReLU -> Linear), bf16 operands into the MXU.
    h1 = jnp.dot(y.astype(jnp.bfloat16), w1_ref[...],
                 preferred_element_type=jnp.float32) + b1_ref[...]
    h1 = jnp.maximum(h1, 0.0)
    ff = jnp.dot(h1.astype(jnp.bfloat16), w2_ref[...],
                 preferred_element_type=jnp.float32) + b2_ref[...]

    # Residual + LayerNorm 2 -> carry for the next layer.
    carry_ref[...] = layer_norm(y + ff, g2_ref[...], be2_ref[...])

    @pl.when(layer == pl.num_programs(2) - 1)
    def _():
        o_ref[...] = carry_ref[...].reshape(b_tile, seq, emb).astype(o_ref.dtype)


# ---------------------------------------------------------------------------
# Wrapper: one pallas_call over (groups-in-slab, batch-tiles, layers).
# ---------------------------------------------------------------------------
_WEIGHT_ORDER = ["wqkv", "bqkv", "wo", "bo", "g1", "be1",
                 "w1", "b1", "w2", "b2", "g2", "be2"]

_ROWS_PER_STEP = 512   # target rows fed to the MXU per grid step


def _vmem_limit_bytes():
    cap = 64 * 1024 * 1024
    try:
        info = pltpu.get_tpu_info()
        cap = getattr(info, "vmem_capacity_bytes", cap) or cap
    except Exception:
        pass
    return max(32 * 1024 * 1024, int(cap * 0.7))


def _encode_slab(x_slab, stacked, *, num_groups, group_start, nhead, nlayers):
    """Run the per-group encoder stacks over a slab (B, num_groups * L, E);
    chunk g of the slab uses group weights (group_start + g)."""
    B, S_slab, E = x_slab.shape
    L = S_slab // num_groups
    head_dim = E // nhead
    H = stacked["w1"].shape[-1]

    # Batch tile: ~_ROWS_PER_STEP rows per grid step; pad B so it divides.
    b_tile = max(1, min(B, _ROWS_PER_STEP // max(L, 1)))
    B_pad = -(-B // b_tile) * b_tile
    if B_pad != B:
        x_slab = jnp.pad(x_slab, ((0, B_pad - B), (0, 0), (0, 0)))
    nb = B_pad // b_tile

    kernel = functools.partial(_layer_kernel, nhead=nhead, head_dim=head_dim)

    def weight_spec(arr):
        # Stacked weight (group, nlayers, ...): group and layer axes squeezed,
        # rest taken whole -> only one layer's weights resident per step.
        block = (None, None) + arr.shape[2:]
        n_rest = arr.ndim - 2

        def idx(g, b, l, gs=group_start, nr=n_rest):
            return (g + gs, l) + (0,) * nr

        return pl.BlockSpec(block, idx)

    in_specs = [pl.BlockSpec((b_tile, L, E), lambda g, b, l: (b, g, 0))]
    in_specs += [weight_spec(stacked[name]) for name in _WEIGHT_ORDER]

    # Advisory cost estimate so XLA schedules the surrounding slice/concat ops
    # around the long custom call.
    n_rows_total = B_pad * S_slab
    flops = 2 * n_rows_total * nlayers * (3 * E * E + 2 * L * E + E * E + 2 * E * H)
    transcendentals = n_rows_total * nlayers * nhead * L
    weight_bytes_per_group = sum(int(stacked[n].nbytes) // stacked[n].shape[0]
                                 for n in _WEIGHT_ORDER)
    bytes_accessed = (2 * int(x_slab.size) * x_slab.dtype.itemsize
                      + nb * num_groups * weight_bytes_per_group)

    out = pl.pallas_call(
        kernel,
        out_shape=jax.ShapeDtypeStruct((B_pad, S_slab, E), x_slab.dtype),
        grid_spec=pltpu.PrefetchScalarGridSpec(
            num_scalar_prefetch=0,
            grid=(num_groups, nb, nlayers),   # layer innermost -> weight
            in_specs=in_specs,                # prefetch, activation carry
            out_specs=pl.BlockSpec((b_tile, L, E), lambda g, b, l: (b, g, 0)),
            scratch_shapes=[pltpu.VMEM((b_tile * L, E), jnp.float32)],
        ),
        compiler_params=pltpu.CompilerParams(
            dimension_semantics=("parallel", "parallel", "arbitrary"),
            vmem_limit_bytes=_vmem_limit_bytes(),
        ),
        cost_estimate=pl.CostEstimate(
            flops=int(flops),
            transcendentals=int(transcendentals),
            bytes_accessed=int(bytes_accessed)),
    )(x_slab, *(stacked[name] for name in _WEIGHT_ORDER))

    return out[:B] if B_pad != B else out


def group_encode_forward(x, stacked, *, group, nhead, nlayers):
    """GroupEnconde.forward: split seq into `group` chunks, run each through
    its own transformer stack, concat along seq.  x: (B, S, E)."""
    B, S, E = x.shape
    assert E % nhead == 0
    L = math.ceil(S / group)
    full = S // L              # number of full-length chunks
    rem = S - full * L         # length of the trailing partial chunk (if any)

    outs = []
    if full > 0:
        if L % 8 == 0 or full == 1:
            outs.append(_encode_slab(x[:, :full * L, :], stacked,
                                     num_groups=full, group_start=0,
                                     nhead=nhead, nlayers=nlayers))
        else:
            # L not a multiple of 8: one call per group so each block covers
            # the whole seq dim of its slab (keeps the (8,128) rule satisfied).
            for g in range(full):
                outs.append(_encode_slab(x[:, g * L:(g + 1) * L, :], stacked,
                                         num_groups=1, group_start=g,
                                         nhead=nhead, nlayers=nlayers))
    if rem > 0:
        outs.append(_encode_slab(x[:, full * L:, :], stacked,
                                 num_groups=1, group_start=full,
                                 nhead=nhead, nlayers=nlayers))
    if len(outs) == 1:
        return outs[0]
    return jnp.concatenate(outs, axis=1)


# ---------------------------------------------------------------------------
# Parameter init (deterministic, synthetic) and stacking for the fused kernel.
# ---------------------------------------------------------------------------
def init_group_encoder_params(key, group, nlayers, emb_size, nhid):
    """params[g][l] = dict of one encoder layer's weights (f32, x @ W conv.)."""
    scale = 0.02
    all_params = []
    for g in range(group):
        layers = []
        for l in range(nlayers):
            k = jax.random.fold_in(jax.random.fold_in(key, g), l)
            ks = jax.random.split(k, 8)
            p = {
                "wq": scale * jax.random.normal(ks[0], (emb_size, emb_size), jnp.float32),
                "bq": jnp.zeros((1, emb_size), jnp.float32),
                "wk": scale * jax.random.normal(ks[1], (emb_size, emb_size), jnp.float32),
                "bk": jnp.zeros((1, emb_size), jnp.float32),
                "wv": scale * jax.random.normal(ks[2], (emb_size, emb_size), jnp.float32),
                "bv": jnp.zeros((1, emb_size), jnp.float32),
                "wo": scale * jax.random.normal(ks[3], (emb_size, emb_size), jnp.float32),
                "bo": jnp.zeros((1, emb_size), jnp.float32),
                "g1": jnp.ones((1, emb_size), jnp.float32),
                "be1": jnp.zeros((1, emb_size), jnp.float32),
                "w1": scale * jax.random.normal(ks[4], (emb_size, nhid), jnp.float32),
                "b1": jnp.zeros((1, nhid), jnp.float32),
                "w2": scale * jax.random.normal(ks[5], (nhid, emb_size), jnp.float32),
                "b2": jnp.zeros((1, emb_size), jnp.float32),
                "g2": jnp.ones((1, emb_size), jnp.float32),
                "be2": jnp.zeros((1, emb_size), jnp.float32),
            }
            layers.append(p)
        all_params.append(layers)
    return all_params


def stack_group_params(params, *, nhead):
    """Stack per-group/per-layer dicts into (group, nlayers, ...) arrays,
    fuse QKV, fold the attention scale into Wq/bq, and cast matmul weights to
    bf16 (LayerNorm params / biases stay f32)."""
    group = len(params)
    nlayers = len(params[0])
    E = params[0][0]["wq"].shape[0]
    head_dim = E // nhead
    scale = 1.0 / math.sqrt(head_dim)

    def st(name):
        return jnp.stack([jnp.stack([params[g][l][name] for l in range(nlayers)])
                          for g in range(group)])

    wqkv = jnp.concatenate([st("wq") * scale, st("wk"), st("wv")], axis=-1)
    bqkv = jnp.concatenate([st("bq") * scale, st("bk"), st("bv")], axis=-1)

    return {
        "wqkv": wqkv.astype(jnp.bfloat16),
        "bqkv": bqkv,
        "wo": st("wo").astype(jnp.bfloat16),   # (group, nlayers, E, E)
        "bo": st("bo"),
        "g1": st("g1"), "be1": st("be1"),
        "w1": st("w1").astype(jnp.bfloat16), "b1": st("b1"),
        "w2": st("w2").astype(jnp.bfloat16), "b2": st("b2"),
        "g2": st("g2"), "be2": st("be2"),
    }


if __name__ == "__main__":
    # Small config consistent with the module's forward.
    group = 2
    batch = 2
    seq_len = 16          # chunk length = ceil(16/2) = 8
    emb_size = 32
    nhead = 4
    nhid = 64
    nlayers = 2

    key = jax.random.PRNGKey(0)
    kx, kp = jax.random.split(key)
    x = jax.random.normal(kx, (batch, seq_len, emb_size), jnp.float32)
    params = init_group_encoder_params(kp, group, nlayers, emb_size, nhid)
    stacked = stack_group_params(params, nhead=nhead)

    fwd = jax.jit(functools.partial(group_encode_forward, group=group,
                                    nhead=nhead, nlayers=nlayers))
    out = fwd(x, stacked)
    out = jax.block_until_ready(out)

    assert out.shape == (batch, seq_len, emb_size), out.shape
    assert jnp.all(jnp.isfinite(out))
    print("KERNEL_OK")
</pallas_src>

<mosaic_0001>
module attributes {stable_mosaic.version = 11 : i64} {
  func.func @_layer_kernel(%arg0: i32, %arg1: i32, %arg2: i32, %arg3: memref<2x8x32xf32, #tpu.memory_space<vmem>>, %arg4: memref<1x1x32x96xbf16, #tpu.memory_space<vmem>>, %arg5: memref<1x1x1x96xf32, #tpu.memory_space<vmem>>, %arg6: memref<1x1x32x32xbf16, #tpu.memory_space<vmem>>, %arg7: memref<1x1x1x32xf32, #tpu.memory_space<vmem>>, %arg8: memref<1x1x1x32xf32, #tpu.memory_space<vmem>>, %arg9: memref<1x1x1x32xf32, #tpu.memory_space<vmem>>, %arg10: memref<1x1x32x64xbf16, #tpu.memory_space<vmem>>, %arg11: memref<1x1x1x64xf32, #tpu.memory_space<vmem>>, %arg12: memref<1x1x64x32xbf16, #tpu.memory_space<vmem>>, %arg13: memref<1x1x1x32xf32, #tpu.memory_space<vmem>>, %arg14: memref<1x1x1x32xf32, #tpu.memory_space<vmem>>, %arg15: memref<1x1x1x32xf32, #tpu.memory_space<vmem>>, %arg16: memref<2x8x32xf32, #tpu.memory_space<vmem>>, %arg17: memref<16x32xf32, #tpu.memory_space<vmem>>) attributes {dimension_semantics = [#tpu.dimension_semantics<parallel>, #tpu.dimension_semantics<parallel>, #tpu.dimension_semantics<arbitrary>], iteration_bounds = array<i64: 2, 1, 2>, scalar_prefetch = 0 : i64, scratch_operands = 1 : i64, tpu.core_type = #tpu.core_type<tc>, window_params = [{transform_indices = @transform_0, window_bounds = array<i64: 2, 8, 32>}, {transform_indices = @transform_1, window_bounds = array<i64: 1, 1, 32, 96>}, {transform_indices = @transform_2, window_bounds = array<i64: 1, 1, 1, 96>}, {transform_indices = @transform_3, window_bounds = array<i64: 1, 1, 32, 32>}, {transform_indices = @transform_4, window_bounds = array<i64: 1, 1, 1, 32>}, {transform_indices = @transform_5, window_bounds = array<i64: 1, 1, 1, 32>}, {transform_indices = @transform_6, window_bounds = array<i64: 1, 1, 1, 32>}, {transform_indices = @transform_7, window_bounds = array<i64: 1, 1, 32, 64>}, {transform_indices = @transform_8, window_bounds = array<i64: 1, 1, 1, 64>}, {transform_indices = @transform_9, window_bounds = array<i64: 1, 1, 64, 32>}, {transform_indices = @transform_10, window_bounds = array<i64: 1, 1, 1, 32>}, {transform_indices = @transform_11, window_bounds = array<i64: 1, 1, 1, 32>}, {transform_indices = @transform_12, window_bounds = array<i64: 1, 1, 1, 32>}, {transform_indices = @transform_13, window_bounds = array<i64: 2, 8, 32>}]} {
    %c0_i32 = arith.constant 0 : i32
    %0 = arith.cmpi eq, %arg2, %c0_i32 : i32
    %1 = arith.extui %0 : i1 to i32
    %c0_i32_0 = arith.constant 0 : i32
    %2 = arith.cmpi ne, %1, %c0_i32_0 : i32
    scf.if %2 {
      %c0_83 = arith.constant 0 : index
      %c0_84 = arith.constant 0 : index
      %c0_85 = arith.constant 0 : index
      %180 = vector.load %arg3[%c0_83, %c0_84, %c0_85] : memref<2x8x32xf32, #tpu.memory_space<vmem>>, vector<2x8x32xf32>
      %181 = vector.shape_cast %180 : vector<2x8x32xf32> to vector<16x32xf32>
      %c0_86 = arith.constant 0 : index
      %c0_87 = arith.constant 0 : index
      %182 = vector.load %arg17[%c0_86, %c0_87] : memref<16x32xf32, #tpu.memory_space<vmem>>, vector<16x32xf32>
      tpu.vector_store %arg17[%c0_86, %c0_87], %181 {strides = array<i32>} : memref<16x32xf32, #tpu.memory_space<vmem>>, vector<16x32xf32>,
    } else {
    }
    %c0 = arith.constant 0 : index
    %c0_1 = arith.constant 0 : index
    %3 = vector.load %arg17[%c0, %c0_1] : memref<16x32xf32, #tpu.memory_space<vmem>>, vector<16x32xf32>
    %4 = arith.truncf %3 : vector<16x32xf32> to vector<16x32xbf16>
    %c0_2 = arith.constant 0 : index
    %c0_3 = arith.constant 0 : index
    %c0_4 = arith.constant 0 : index
    %c0_5 = arith.constant 0 : index
    %5 = vector.load %arg4[%c0_2, %c0_3, %c0_4, %c0_5] : memref<1x1x32x96xbf16, #tpu.memory_space<vmem>>, vector<1x1x32x96xbf16>
    %6 = vector.shape_cast %5 : vector<1x1x32x96xbf16> to vector<32x96xbf16>
    %cst = arith.constant dense<0.000000e+00> : vector<16x96xf32>
    %7 = tpu.matmul %4, %6, %cst {dimension_numbers = #tpu.dot_dimension_numbers<[1], [0], [0], [1], [0, 0, 1, 1], [], []>} : vector<16x32xbf16>, vector<32x96xbf16>, vector<16x96xf32> -> vector<16x96xf32>
    %c0_6 = arith.constant 0 : index
    %c0_7 = arith.constant 0 : index
    %c0_8 = arith.constant 0 : index
    %c0_9 = arith.constant 0 : index
    %8 = vector.load %arg5[%c0_6, %c0_7, %c0_8, %c0_9] : memref<1x1x1x96xf32, #tpu.memory_space<vmem>>, vector<1x1x1x96xf32>
    %9 = vector.shape_cast %8 : vector<1x1x1x96xf32> to vector<1x96xf32>
    %10 = vector.broadcast %9 : vector<1x96xf32> to vector<16x96xf32>
    %11 = arith.addf %7, %10 : vector<16x96xf32>
    %12 = vector.extract_strided_slice %11 {offsets = [0, 0], sizes = [16, 32], strides = [1, 1]} : vector<16x96xf32> to vector<16x32xf32>
    %13 = vector.shape_cast %12 : vector<16x32xf32> to vector<2x8x32xf32>
    %14 = vector.extract_strided_slice %11 {offsets = [0, 32], sizes = [16, 32], strides = [1, 1]} : vector<16x96xf32> to vector<16x32xf32>
    %15 = vector.shape_cast %14 : vector<16x32xf32> to vector<2x8x32xf32>
    %16 = vector.extract_strided_slice %11 {offsets = [0, 64], sizes = [16, 32], strides = [1, 1]} : vector<16x96xf32> to vector<16x32xf32>
    %17 = vector.shape_cast %16 : vector<16x32xf32> to vector<2x8x32xf32>
    %18 = vector.extract_strided_slice %13 {offsets = [0, 0, 0], sizes = [2, 8, 8], strides = [1, 1, 1]} : vector<2x8x32xf32> to vector<2x8x8xf32>
    %19 = arith.truncf %18 : vector<2x8x8xf32> to vector<2x8x8xbf16>
    %20 = vector.extract_strided_slice %15 {offsets = [0, 0, 0], sizes = [2, 8, 8], strides = [1, 1, 1]} : vector<2x8x32xf32> to vector<2x8x8xf32>
    %21 = arith.truncf %20 : vector<2x8x8xf32> to vector<2x8x8xbf16>
    %22 = vector.extract_strided_slice %17 {offsets = [0, 0, 0], sizes = [2, 8, 8], strides = [1, 1, 1]} : vector<2x8x32xf32> to vector<2x8x8xf32>
    %23 = arith.truncf %22 : vector<2x8x8xf32> to vector<2x8x8xbf16>
    "tpu.trace_start"() <{level = 10 : i32, message = "bqd,bkd->bqk"}> : () -> ()
    %cst_10 = arith.constant dense<0.000000e+00> : vector<2x8x8xf32>
    %24 = tpu.matmul %19, %21, %cst_10 {dimension_numbers = #tpu.dot_dimension_numbers<[2], [2], [1], [1], [0, 0, 0, 1, 1, 1], [0], [0]>} : vector<2x8x8xbf16>, vector<2x8x8xbf16>, vector<2x8x8xf32> -> vector<2x8x8xf32>
    "tpu.trace_stop"() : () -> ()
    %cst_11 = arith.constant dense<0xFF800000> : vector<2x8xf32>
    %25 = vector.multi_reduction <maximumf>, %24, %cst_11 [2] : vector<2x8x8xf32> to vector<2x8xf32>
    %26 = vector.shape_cast %25 : vector<2x8xf32> to vector<2x8x1xf32>
    %27 = vector.broadcast %26 : vector<2x8x1xf32> to vector<2x8x8xf32>
    %28 = arith.subf %24, %27 : vector<2x8x8xf32>
    %29 = math.exp %28 : vector<2x8x8xf32>
    %cst_12 = arith.constant dense<0.000000e+00> : vector<2x8xf32>
    %30 = vector.multi_reduction <add>, %29, %cst_12 [2] : vector<2x8x8xf32> to vector<2x8xf32>
    %31 = vector.shape_cast %30 : vector<2x8xf32> to vector<2x8x1xf32>
    %32 = tpu.reciprocal %31 {approx = true} : vector<2x8x1xf32> -> vector<2x8x1xf32>
    %33 = vector.broadcast %32 : vector<2x8x1xf32> to vector<2x8x8xf32>
    %34 = arith.mulf %29, %33 : vector<2x8x8xf32>
    %35 = arith.truncf %34 : vector<2x8x8xf32> to vector<2x8x8xbf16>
    "tpu.trace_start"() <{level = 10 : i32, message = "bqk,bkd->bqd"}> : () -> ()
    %cst_13 = arith.constant dense<0.000000e+00> : vector<2x8x8xf32>
    %36 = tpu.matmul %35, %23, %cst_13 {dimension_numbers = #tpu.dot_dimension_numbers<[2], [1], [1], [2], [0, 0, 0, 1, 1, 2], [0], [0]>} : vector<2x8x8xbf16>, vector<2x8x8xbf16>, vector<2x8x8xf32> -> vector<2x8x8xf32>
    "tpu.trace_stop"() : () -> ()
    %37 = vector.extract_strided_slice %13 {offsets = [0, 0, 8], sizes = [2, 8, 8], strides = [1, 1, 1]} : vector<2x8x32xf32> to vector<2x8x8xf32>
    %38 = arith.truncf %37 : vector<2x8x8xf32> to vector<2x8x8xbf16>
    %39 = vector.extract_strided_slice %15 {offsets = [0, 0, 8], sizes = [2, 8, 8], strides = [1, 1, 1]} : vector<2x8x32xf32> to vector<2x8x8xf32>
    %40 = arith.truncf %39 : vector<2x8x8xf32> to vector<2x8x8xbf16>
    %41 = vector.extract_strided_slice %17 {offsets = [0, 0, 8], sizes = [2, 8, 8], strides = [1, 1, 1]} : vector<2x8x32xf32> to vector<2x8x8xf32>
    %42 = arith.truncf %41 : vector<2x8x8xf32> to vector<2x8x8xbf16>
    "tpu.trace_start"() <{level = 10 : i32, message = "bqd,bkd->bqk"}> : () -> ()
    %cst_14 = arith.constant dense<0.000000e+00> : vector<2x8x8xf32>
    %43 = tpu.matmul %38, %40, %cst_14 {dimension_numbers = #tpu.dot_dimension_numbers<[2], [2], [1], [1], [0, 0, 0, 1, 1, 1], [0], [0]>} : vector<2x8x8xbf16>, vector<2x8x8xbf16>, vector<2x8x8xf32> -> vector<2x8x8xf32>
    "tpu.trace_stop"() : () -> ()
    %cst_15 = arith.constant dense<0xFF800000> : vector<2x8xf32>
    %44 = vector.multi_reduction <maximumf>, %43, %cst_15 [2] : vector<2x8x8xf32> to vector<2x8xf32>
    %45 = vector.shape_cast %44 : vector<2x8xf32> to vector<2x8x1xf32>
    %46 = vector.broadcast %45 : vector<2x8x1xf32> to vector<2x8x8xf32>
    %47 = arith.subf %43, %46 : vector<2x8x8xf32>
    %48 = math.exp %47 : vector<2x8x8xf32>
    %cst_16 = arith.constant dense<0.000000e+00> : vector<2x8xf32>
    %49 = vector.multi_reduction <add>, %48, %cst_16 [2] : vector<2x8x8xf32> to vector<2x8xf32>
    %50 = vector.shape_cast %49 : vector<2x8xf32> to vector<2x8x1xf32>
    %51 = tpu.reciprocal %50 {approx = true} : vector<2x8x1xf32> -> vector<2x8x1xf32>
    %52 = vector.broadcast %51 : vector<2x8x1xf32> to vector<2x8x8xf32>
    %53 = arith.mulf %48, %52 : vector<2x8x8xf32>
    %54 = arith.truncf %53 : vector<2x8x8xf32> to vector<2x8x8xbf16>
    "tpu.trace_start"() <{level = 10 : i32, message = "bqk,bkd->bqd"}> : () -> ()
    %cst_17 = arith.constant dense<0.000000e+00> : vector<2x8x8xf32>
    %55 = tpu.matmul %54, %42, %cst_17 {dimension_numbers = #tpu.dot_dimension_numbers<[2], [1], [1], [2], [0, 0, 0, 1, 1, 2], [0], [0]>} : vector<2x8x8xbf16>, vector<2x8x8xbf16>, vector<2x8x8xf32> -> vector<2x8x8xf32>
    "tpu.trace_stop"() : () -> ()
    %56 = vector.extract_strided_slice %13 {offsets = [0, 0, 16], sizes = [2, 8, 8], strides = [1, 1, 1]} : vector<2x8x32xf32> to vector<2x8x8xf32>
    %57 = arith.truncf %56 : vector<2x8x8xf32> to vector<2x8x8xbf16>
    %58 = vector.extract_strided_slice %15 {offsets = [0, 0, 16], sizes = [2, 8, 8], strides = [1, 1, 1]} : vector<2x8x32xf32> to vector<2x8x8xf32>
    %59 = arith.truncf %58 : vector<2x8x8xf32> to vector<2x8x8xbf16>
    %60 = vector.extract_strided_slice %17 {offsets = [0, 0, 16], sizes = [2, 8, 8], strides = [1, 1, 1]} : vector<2x8x32xf32> to vector<2x8x8xf32>
    %61 = arith.truncf %60 : vector<2x8x8xf32> to vector<2x8x8xbf16>
    "tpu.trace_start"() <{level = 10 : i32, message = "bqd,bkd->bqk"}> : () -> ()
    %cst_18 = arith.constant dense<0.000000e+00> : vector<2x8x8xf32>
    %62 = tpu.matmul %57, %59, %cst_18 {dimension_numbers = #tpu.dot_dimension_numbers<[2], [2], [1], [1], [0, 0, 0, 1, 1, 1], [0], [0]>} : vector<2x8x8xbf16>, vector<2x8x8xbf16>, vector<2x8x8xf32> -> vector<2x8x8xf32>
    "tpu.trace_stop"() : () -> ()
    %cst_19 = arith.constant dense<0xFF800000> : vector<2x8xf32>
    %63 = vector.multi_reduction <maximumf>, %62, %cst_19 [2] : vector<2x8x8xf32> to vector<2x8xf32>
    %64 = vector.shape_cast %63 : vector<2x8xf32> to vector<2x8x1xf32>
    %65 = vector.broadcast %64 : vector<2x8x1xf32> to vector<2x8x8xf32>
    %66 = arith.subf %62, %65 : vector<2x8x8xf32>
    %67 = math.exp %66 : vector<2x8x8xf32>
    %cst_20 = arith.constant dense<0.000000e+00> : vector<2x8xf32>
    %68 = vector.multi_reduction <add>, %67, %cst_20 [2] : vector<2x8x8xf32> to vector<2x8xf32>
    %69 = vector.shape_cast %68 : vector<2x8xf32> to vector<2x8x1xf32>
    %70 = tpu.reciprocal %69 {approx = true} : vector<2x8x1xf32> -> vector<2x8x1xf32>
    %71 = vector.broadcast %70 : vector<2x8x1xf32> to vector<2x8x8xf32>
    %72 = arith.mulf %67, %71 : vector<2x8x8xf32>
    %73 = arith.truncf %72 : vector<2x8x8xf32> to vector<2x8x8xbf16>
    "tpu.trace_start"() <{level = 10 : i32, message = "bqk,bkd->bqd"}> : () -> ()
    %cst_21 = arith.constant dense<0.000000e+00> : vector<2x8x8xf32>
    %74 = tpu.matmul %73, %61, %cst_21 {dimension_numbers = #tpu.dot_dimension_numbers<[2], [1], [1], [2], [0, 0, 0, 1, 1, 2], [0], [0]>} : vector<2x8x8xbf16>, vector<2x8x8xbf16>, vector<2x8x8xf32> -> vector<2x8x8xf32>
    "tpu.trace_stop"() : () -> ()
    %75 = vector.extract_strided_slice %13 {offsets = [0, 0, 24], sizes = [2, 8, 8], strides = [1, 1, 1]} : vector<2x8x32xf32> to vector<2x8x8xf32>
    %76 = arith.truncf %75 : vector<2x8x8xf32> to vector<2x8x8xbf16>
    %77 = vector.extract_strided_slice %15 {offsets = [0, 0, 24], sizes = [2, 8, 8], strides = [1, 1, 1]} : vector<2x8x32xf32> to vector<2x8x8xf32>
    %78 = arith.truncf %77 : vector<2x8x8xf32> to vector<2x8x8xbf16>
    %79 = vector.extract_strided_slice %17 {offsets = [0, 0, 24], sizes = [2, 8, 8], strides = [1, 1, 1]} : vector<2x8x32xf32> to vector<2x8x8xf32>
    %80 = arith.truncf %79 : vector<2x8x8xf32> to vector<2x8x8xbf16>
    "tpu.trace_start"() <{level = 10 : i32, message = "bqd,bkd->bqk"}> : () -> ()
    %cst_22 = arith.constant dense<0.000000e+00> : vector<2x8x8xf32>
    %81 = tpu.matmul %76, %78, %cst_22 {dimension_numbers = #tpu.dot_dimension_numbers<[2], [2], [1], [1], [0, 0, 0, 1, 1, 1], [0], [0]>} : vector<2x8x8xbf16>, vector<2x8x8xbf16>, vector<2x8x8xf32> -> vector<2x8x8xf32>
    "tpu.trace_stop"() : () -> ()
    %cst_23 = arith.constant dense<0xFF800000> : vector<2x8xf32>
    %82 = vector.multi_reduction <maximumf>, %81, %cst_23 [2] : vector<2x8x8xf32> to vector<2x8xf32>
    %83 = vector.shape_cast %82 : vector<2x8xf32> to vector<2x8x1xf32>
    %84 = vector.broadcast %83 : vector<2x8x1xf32> to vector<2x8x8xf32>
    %85 = arith.subf %81, %84 : vector<2x8x8xf32>
    %86 = math.exp %85 : vector<2x8x8xf32>
    %cst_24 = arith.constant dense<0.000000e+00> : vector<2x8xf32>
    %87 = vector.multi_reduction <add>, %86, %cst_24 [2] : vector<2x8x8xf32> to vector<2x8xf32>
    %88 = vector.shape_cast %87 : vector<2x8xf32> to vector<2x8x1xf32>
    %89 = tpu.reciprocal %88 {approx = true} : vector<2x8x1xf32> -> vector<2x8x1xf32>
    %90 = vector.broadcast %89 : vector<2x8x1xf32> to vector<2x8x8xf32>
    %91 = arith.mulf %86, %90 : vector<2x8x8xf32>
    %92 = arith.truncf %91 : vector<2x8x8xf32> to vector<2x8x8xbf16>
    "tpu.trace_start"() <{level = 10 : i32, message = "bqk,bkd->bqd"}> : () -> ()
    %cst_25 = arith.constant dense<0.000000e+00> : vector<2x8x8xf32>
    %93 = tpu.matmul %92, %80, %cst_25 {dimension_numbers = #tpu.dot_dimension_numbers<[2], [1], [1], [2], [0, 0, 0, 1, 1, 2], [0], [0]>} : vector<2x8x8xbf16>, vector<2x8x8xbf16>, vector<2x8x8xf32> -> vector<2x8x8xf32>
    "tpu.trace_stop"() : () -> ()
    %94 = tpu.concatenate %36, %55, %74, %93 in 2 : vector<2x8x8xf32>, vector<2x8x8xf32>, vector<2x8x8xf32>, vector<2x8x8xf32> -> vector<2x8x32xf32>
    %95 = vector.shape_cast %94 : vector<2x8x32xf32> to vector<16x32xf32>
    %96 = arith.truncf %95 : vector<16x32xf32> to vector<16x32xbf16>
    %c0_26 = arith.constant 0 : index
    %c0_27 = arith.constant 0 : index
    %c0_28 = arith.constant 0 : index
    %c0_29 = arith.constant 0 : index
    %97 = vector.load %arg6[%c0_26, %c0_27, %c0_28, %c0_29] : memref<1x1x32x32xbf16, #tpu.memory_space<vmem>>, vector<1x1x32x32xbf16>
    %98 = vector.shape_cast %97 : vector<1x1x32x32xbf16> to vector<32x32xbf16>
    %cst_30 = arith.constant dense<0.000000e+00> : vector<16x32xf32>
    %99 = tpu.matmul %96, %98, %cst_30 {dimension_numbers = #tpu.dot_dimension_numbers<[1], [0], [0], [1], [0, 0, 1, 1], [], []>} : vector<16x32xbf16>, vector<32x32xbf16>, vector<16x32xf32> -> vector<16x32xf32>
    %c0_31 = arith.constant 0 : index
    %c0_32 = arith.constant 0 : index
    %c0_33 = arith.constant 0 : index
    %c0_34 = arith.constant 0 : index
    %100 = vector.load %arg7[%c0_31, %c0_32, %c0_33, %c0_34] : memref<1x1x1x32xf32, #tpu.memory_space<vmem>>, vector<1x1x1x32xf32>
    %101 = vector.shape_cast %100 : vector<1x1x1x32xf32> to vector<1x32xf32>
    %102 = vector.broadcast %101 : vector<1x32xf32> to vector<16x32xf32>
    %103 = arith.addf %99, %102 : vector<16x32xf32>
    %104 = arith.addf %3, %103 : vector<16x32xf32>
    %c0_35 = arith.constant 0 : index
    %c0_36 = arith.constant 0 : index
    %c0_37 = arith.constant 0 : index
    %c0_38 = arith.constant 0 : index
    %105 = vector.load %arg8[%c0_35, %c0_36, %c0_37, %c0_38] : memref<1x1x1x32xf32, #tpu.memory_space<vmem>>, vector<1x1x1x32xf32>
    %106 = vector.shape_cast %105 : vector<1x1x1x32xf32> to vector<1x32xf32>
    %c0_39 = arith.constant 0 : index
    %c0_40 = arith.constant 0 : index
    %c0_41 = arith.constant 0 : index
    %c0_42 = arith.constant 0 : index
    %107 = vector.load %arg9[%c0_39, %c0_40, %c0_41, %c0_42] : memref<1x1x1x32xf32, #tpu.memory_space<vmem>>, vector<1x1x1x32xf32>
    %108 = vector.shape_cast %107 : vector<1x1x1x32xf32> to vector<1x32xf32>
    %cst_43 = arith.constant dense<0.000000e+00> : vector<16xf32>
    %109 = vector.multi_reduction <add>, %104, %cst_43 [1] : vector<16x32xf32> to vector<16xf32>
    %110 = vector.shape_cast %109 : vector<16xf32> to vector<16x1xf32>
    %cst_44 = arith.constant 3.200000e+01 : f32
    %111 = vector.broadcast %cst_44 : f32 to vector<16x1xf32>
    %112 = arith.divf %110, %111 : vector<16x1xf32>
    %113 = vector.broadcast %112 : vector<16x1xf32> to vector<16x32xf32>
    %114 = arith.subf %104, %113 : vector<16x32xf32>
    %115 = arith.mulf %114, %114 : vector<16x32xf32>
    %cst_45 = arith.constant dense<0.000000e+00> : vector<16xf32>
    %116 = vector.multi_reduction <add>, %115, %cst_45 [1] : vector<16x32xf32> to vector<16xf32>
    %117 = vector.shape_cast %116 : vector<16xf32> to vector<16x1xf32>
    %cst_46 = arith.constant 3.200000e+01 : f32
    %118 = vector.broadcast %cst_46 : f32 to vector<16x1xf32>
    %119 = arith.divf %117, %118 : vector<16x1xf32>
    %120 = vector.broadcast %112 : vector<16x1xf32> to vector<16x32xf32>
    %121 = arith.subf %104, %120 : vector<16x32xf32>
    %cst_47 = arith.constant 9.99999974E-6 : f32
    %122 = vector.broadcast %cst_47 : f32 to vector<16x1xf32>
    %123 = arith.addf %119, %122 : vector<16x1xf32>
    %124 = math.rsqrt %123 : vector<16x1xf32>
    %125 = vector.broadcast %124 : vector<16x1xf32> to vector<16x32xf32>
    %126 = arith.mulf %121, %125 : vector<16x32xf32>
    %127 = vector.broadcast %106 : vector<1x32xf32> to vector<16x32xf32>
    %128 = arith.mulf %126, %127 : vector<16x32xf32>
    %129 = vector.broadcast %108 : vector<1x32xf32> to vector<16x32xf32>
    %130 = arith.addf %128, %129 : vector<16x32xf32>
    %131 = arith.truncf %130 : vector<16x32xf32> to vector<16x32xbf16>
    %c0_48 = arith.constant 0 : index
    %c0_49 = arith.constant 0 : index
    %c0_50 = arith.constant 0 : index
    %c0_51 = arith.constant 0 : index
    %132 = vector.load %arg10[%c0_48, %c0_49, %c0_50, %c0_51] : memref<1x1x32x64xbf16, #tpu.memory_space<vmem>>, vector<1x1x32x64xbf16>
    %133 = vector.shape_cast %132 : vector<1x1x32x64xbf16> to vector<32x64xbf16>
    %cst_52 = arith.constant dense<0.000000e+00> : vector<16x64xf32>
    %134 = tpu.matmul %131, %133, %cst_52 {dimension_numbers = #tpu.dot_dimension_numbers<[1], [0], [0], [1], [0, 0, 1, 1], [], []>} : vector<16x32xbf16>, vector<32x64xbf16>, vector<16x64xf32> -> vector<16x64xf32>
    %c0_53 = arith.constant 0 : index
    %c0_54 = arith.constant 0 : index
    %c0_55 = arith.constant 0 : index
    %c0_56 = arith.constant 0 : index
    %135 = vector.load %arg11[%c0_53, %c0_54, %c0_55, %c0_56] : memref<1x1x1x64xf32, #tpu.memory_space<vmem>>, vector<1x1x1x64xf32>
    %136 = vector.shape_cast %135 : vector<1x1x1x64xf32> to vector<1x64xf32>
    %137 = vector.broadcast %136 : vector<1x64xf32> to vector<16x64xf32>
    %138 = arith.addf %134, %137 : vector<16x64xf32>
    %cst_57 = arith.constant 0.000000e+00 : f32
    %139 = vector.broadcast %cst_57 : f32 to vector<16x64xf32>
    %140 = arith.maximumf %138, %139 : vector<16x64xf32>
    %141 = arith.truncf %140 : vector<16x64xf32> to vector<16x64xbf16>
    %c0_58 = arith.constant 0 : index
    %c0_59 = arith.constant 0 : index
    %c0_60 = arith.constant 0 : index
    %c0_61 = arith.constant 0 : index
    %142 = vector.load %arg12[%c0_58, %c0_59, %c0_60, %c0_61] : memref<1x1x64x32xbf16, #tpu.memory_space<vmem>>, vector<1x1x64x32xbf16>
    %143 = vector.shape_cast %142 : vector<1x1x64x32xbf16> to vector<64x32xbf16>
    %cst_62 = arith.constant dense<0.000000e+00> : vector<16x32xf32>
    %144 = tpu.matmul %141, %143, %cst_62 {dimension_numbers = #tpu.dot_dimension_numbers<[1], [0], [0], [1], [0, 0, 1, 1], [], []>} : vector<16x64xbf16>, vector<64x32xbf16>, vector<16x32xf32> -> vector<16x32xf32>
    %c0_63 = arith.constant 0 : index
    %c0_64 = arith.constant 0 : index
    %c0_65 = arith.constant 0 : index
    %c0_66 = arith.constant 0 : index
    %145 = vector.load %arg13[%c0_63, %c0_64, %c0_65, %c0_66] : memref<1x1x1x32xf32, #tpu.memory_space<vmem>>, vector<1x1x1x32xf32>
    %146 = vector.shape_cast %145 : vector<1x1x1x32xf32> to vector<1x32xf32>
    %147 = vector.broadcast %146 : vector<1x32xf32> to vector<16x32xf32>
    %148 = arith.addf %144, %147 : vector<16x32xf32>
    %149 = arith.addf %130, %148 : vector<16x32xf32>
    %c0_67 = arith.constant 0 : index
    %c0_68 = arith.constant 0 : index
    %c0_69 = arith.constant 0 : index
    %c0_70 = arith.constant 0 : index
    %150 = vector.load %arg14[%c0_67, %c0_68, %c0_69, %c0_70] : memref<1x1x1x32xf32, #tpu.memory_space<vmem>>, vector<1x1x1x32xf32>
    %151 = vector.shape_cast %150 : vector<1x1x1x32xf32> to vector<1x32xf32>
    %c0_71 = arith.constant 0 : index
    %c0_72 = arith.constant 0 : index
    %c0_73 = arith.constant 0 : index
    %c0_74 = arith.constant 0 : index
    %152 = vector.load %arg15[%c0_71, %c0_72, %c0_73, %c0_74] : memref<1x1x1x32xf32, #tpu.memory_space<vmem>>, vector<1x1x1x32xf32>
    %153 = vector.shape_cast %152 : vector<1x1x1x32xf32> to vector<1x32xf32>
    %cst_75 = arith.constant dense<0.000000e+00> : vector<16xf32>
    %154 = vector.multi_reduction <add>, %149, %cst_75 [1] : vector<16x32xf32> to vector<16xf32>
    %155 = vector.shape_cast %154 : vector<16xf32> to vector<16x1xf32>
    %cst_76 = arith.constant 3.200000e+01 : f32
    %156 = vector.broadcast %cst_76 : f32 to vector<16x1xf32>
    %157 = arith.divf %155, %156 : vector<16x1xf32>
    %158 = vector.broadcast %157 : vector<16x1xf32> to vector<16x32xf32>
    %159 = arith.subf %149, %158 : vector<16x32xf32>
    %160 = arith.mulf %159, %159 : vector<16x32xf32>
    %cst_77 = arith.constant dense<0.000000e+00> : vector<16xf32>
    %161 = vector.multi_reduction <add>, %160, %cst_77 [1] : vector<16x32xf32> to vector<16xf32>
    %162 = vector.shape_cast %161 : vector<16xf32> to vector<16x1xf32>
    %cst_78 = arith.constant 3.200000e+01 : f32
    %163 = vector.broadcast %cst_78 : f32 to vector<16x1xf32>
    %164 = arith.divf %162, %163 : vector<16x1xf32>
    %165 = vector.broadcast %157 : vector<16x1xf32> to vector<16x32xf32>
    %166 = arith.subf %149, %165 : vector<16x32xf32>
    %cst_79 = arith.constant 9.99999974E-6 : f32
    %167 = vector.broadcast %cst_79 : f32 to vector<16x1xf32>
    %168 = arith.addf %164, %167 : vector<16x1xf32>
    %169 = math.rsqrt %168 : vector<16x1xf32>
    %170 = vector.broadcast %169 : vector<16x1xf32> to vector<16x32xf32>
    %171 = arith.mulf %166, %170 : vector<16x32xf32>
    %172 = vector.broadcast %151 : vector<1x32xf32> to vector<16x32xf32>
    %173 = arith.mulf %171, %172 : vector<16x32xf32>
    %174 = vector.broadcast %153 : vector<1x32xf32> to vector<16x32xf32>
    %175 = arith.addf %173, %174 : vector<16x32xf32>
    %c0_80 = arith.constant 0 : index
    %c0_81 = arith.constant 0 : index
    %176 = vector.load %arg17[%c0_80, %c0_81] : memref<16x32xf32, #tpu.memory_space<vmem>>, vector<16x32xf32>
    tpu.vector_store %arg17[%c0_80, %c0_81], %175 {strides = array<i32>} : memref<16x32xf32, #tpu.memory_space<vmem>>, vector<16x32xf32>,
    %c1_i32 = arith.constant 1 : i32
    %177 = arith.cmpi eq, %arg2, %c1_i32 : i32
    %178 = arith.extui %177 : i1 to i32
    %c0_i32_82 = arith.constant 0 : i32
    %179 = arith.cmpi ne, %178, %c0_i32_82 : i32
    scf.if %179 {
      %c0_83 = arith.constant 0 : index
      %c0_84 = arith.constant 0 : index
      %180 = vector.load %arg17[%c0_83, %c0_84] : memref<16x32xf32, #tpu.memory_space<vmem>>, vector<16x32xf32>
      %181 = vector.shape_cast %180 : vector<16x32xf32> to vector<2x8x32xf32>
      %c0_85 = arith.constant 0 : index
      %c0_86 = arith.constant 0 : index
      %c0_87 = arith.constant 0 : index
      %182 = vector.load %arg16[%c0_85, %c0_86, %c0_87] : memref<2x8x32xf32, #tpu.memory_space<vmem>>, vector<2x8x32xf32>
      tpu.vector_store %arg16[%c0_85, %c0_86, %c0_87], %181 {strides = array<i32>} : memref<2x8x32xf32, #tpu.memory_space<vmem>>, vector<2x8x32xf32>,
    } else {
    }
    return
  }
  func.func @transform_0(%arg0: i32, %arg1: i32, %arg2: i32) -> (i32, i32, i32) {
    %c0_i32 = arith.constant 0 : i32
    %c0_i32_0 = arith.constant 0 : i32
    return %arg1, %arg0, %c0_i32 : i32, i32, i32
  }
  func.func @transform_1(%arg0: i32, %arg1: i32, %arg2: i32) -> (i32, i32, i32, i32) {
    %c0_i32 = arith.constant 0 : i32
    %0 = arith.addi %arg0, %c0_i32 : i32
    %c0_i32_0 = arith.constant 0 : i32
    %c0_i32_1 = arith.constant 0 : i32
    %c0_i32_2 = arith.constant 0 : i32
    return %0, %arg2, %c0_i32_0, %c0_i32_1 : i32, i32, i32, i32
  }
  func.func @transform_2(%arg0: i32, %arg1: i32, %arg2: i32) -> (i32, i32, i32, i32) {
    %c0_i32 = arith.constant 0 : i32
    %0 = arith.addi %arg0, %c0_i32 : i32
    %c0_i32_0 = arith.constant 0 : i32
    %c0_i32_1 = arith.constant 0 : i32
    %c0_i32_2 = arith.constant 0 : i32
    return %0, %arg2, %c0_i32_0, %c0_i32_1 : i32, i32, i32, i32
  }
  func.func @transform_3(%arg0: i32, %arg1: i32, %arg2: i32) -> (i32, i32, i32, i32) {
    %c0_i32 = arith.constant 0 : i32
    %0 = arith.addi %arg0, %c0_i32 : i32
    %c0_i32_0 = arith.constant 0 : i32
    %c0_i32_1 = arith.constant 0 : i32
    %c0_i32_2 = arith.constant 0 : i32
    return %0, %arg2, %c0_i32_0, %c0_i32_1 : i32, i32, i32, i32
  }
  func.func @transform_4(%arg0: i32, %arg1: i32, %arg2: i32) -> (i32, i32, i32, i32) {
    %c0_i32 = arith.constant 0 : i32
    %0 = arith.addi %arg0, %c0_i32 : i32
    %c0_i32_0 = arith.constant 0 : i32
    %c0_i32_1 = arith.constant 0 : i32
    %c0_i32_2 = arith.constant 0 : i32
    return %0, %arg2, %c0_i32_0, %c0_i32_1 : i32, i32, i32, i32
  }
  func.func @transform_5(%arg0: i32, %arg1: i32, %arg2: i32) -> (i32, i32, i32, i32) {
    %c0_i32 = arith.constant 0 : i32
    %0 = arith.addi %arg0, %c0_i32 : i32
    %c0_i32_0 = arith.constant 0 : i32
    %c0_i32_1 = arith.constant 0 : i32
    %c0_i32_2 = arith.constant 0 : i32
    return %0, %arg2, %c0_i32_0, %c0_i32_1 : i32, i32, i32, i32
  }
  func.func @transform_6(%arg0: i32, %arg1: i32, %arg2: i32) -> (i32, i32, i32, i32) {
    %c0_i32 = arith.constant 0 : i32
    %0 = arith.addi %arg0, %c0_i32 : i32
    %c0_i32_0 = arith.constant 0 : i32
    %c0_i32_1 = arith.constant 0 : i32
    %c0_i32_2 = arith.constant 0 : i32
    return %0, %arg2, %c0_i32_0, %c0_i32_1 : i32, i32, i32, i32
  }
  func.func @transform_7(%arg0: i32, %arg1: i32, %arg2: i32) -> (i32, i32, i32, i32) {
    %c0_i32 = arith.constant 0 : i32
    %0 = arith.addi %arg0, %c0_i32 : i32
    %c0_i32_0 = arith.constant 0 : i32
    %c0_i32_1 = arith.constant 0 : i32
    %c0_i32_2 = arith.constant 0 : i32
    return %0, %arg2, %c0_i32_0, %c0_i32_1 : i32, i32, i32, i32
  }
  func.func @transform_8(%arg0: i32, %arg1: i32, %arg2: i32) -> (i32, i32, i32, i32) {
    %c0_i32 = arith.constant 0 : i32
    %0 = arith.addi %arg0, %c0_i32 : i32
    %c0_i32_0 = arith.constant 0 : i32
    %c0_i32_1 = arith.constant 0 : i32
    %c0_i32_2 = arith.constant 0 : i32
    return %0, %arg2, %c0_i32_0, %c0_i32_1 : i32, i32, i32, i32
  }
  func.func @transform_9(%arg0: i32, %arg1: i32, %arg2: i32) -> (i32, i32, i32, i32) {
    %c0_i32 = arith.constant 0 : i32
    %0 = arith.addi %arg0, %c0_i32 : i32
    %c0_i32_0 = arith.constant 0 : i32
    %c0_i32_1 = arith.constant 0 : i32
    %c0_i32_2 = arith.constant 0 : i32
    return %0, %arg2, %c0_i32_0, %c0_i32_1 : i32, i32, i32, i32
  }
  func.func @transform_10(%arg0: i32, %arg1: i32, %arg2: i32) -> (i32, i32, i32, i32) {
    %c0_i32 = arith.constant 0 : i32
    %0 = arith.addi %arg0, %c0_i32 : i32
    %c0_i32_0 = arith.constant 0 : i32
    %c0_i32_1 = arith.constant 0 : i32
    %c0_i32_2 = arith.constant 0 : i32
    return %0, %arg2, %c0_i32_0, %c0_i32_1 : i32, i32, i32, i32
  }
  func.func @transform_11(%arg0: i32, %arg1: i32, %arg2: i32) -> (i32, i32, i32, i32) {
    %c0_i32 = arith.constant 0 : i32
    %0 = arith.addi %arg0, %c0_i32 : i32
    %c0_i32_0 = arith.constant 0 : i32
    %c0_i32_1 = arith.constant 0 : i32
    %c0_i32_2 = arith.constant 0 : i32
    return %0, %arg2, %c0_i32_0, %c0_i32_1 : i32, i32, i32, i32
  }
  func.func @transform_12(%arg0: i32, %arg1: i32, %arg2: i32) -> (i32, i32, i32, i32) {
    %c0_i32 = arith.constant 0 : i32
    %0 = arith.addi %arg0, %c0_i32 : i32
    %c0_i32_0 = arith.constant 0 : i32
    %c0_i32_1 = arith.constant 0 : i32
    %c0_i32_2 = arith.constant 0 : i32
    return %0, %arg2, %c0_i32_0, %c0_i32_1 : i32, i32, i32, i32
  }
  func.func @transform_13(%arg0: i32, %arg1: i32, %arg2: i32) -> (i32, i32, i32) {
    %c0_i32 = arith.constant 0 : i32
    %c0_i32_0 = arith.constant 0 : i32
    return %arg1, %arg0, %c0_i32 : i32, i32, i32
  }
}

</mosaic_0001>

<bundles_post_ra>
// kernel: group_encode_forward.1
= control target key start
LH: loop header
LB: loop body
LE: loop exit
PB: predicated region body
PF: predicated region fallthrough
CT: control target
= control target key end

     0   :  { %s4068_s0 = inlined_call_operand.hbm [shape: f32[2,16,32], index: 0, kind: input, shape index: {}]   ;;  %s4069_s1 = inlined_call_operand.vmem [shape: bf16[2,2,32,96], index: 1, kind: input, shape index: {}]   ;;  %s4070_s2 = inlined_call_operand.vmem [shape: f32[2,2,1,96], index: 2, kind: input, shape index: {}]   ;;  %s4071_s3 = inlined_call_operand.vmem [shape: bf16[2,2,32,32], index: 3, kind: input, shape index: {}]   ;;  %s4072_s4 = inlined_call_operand.vmem [shape: f32[2,2,1,32], index: 4, kind: input, shape index: {}]   ;;  %s4073_s5 = inlined_call_operand.vmem [shape: f32[2,2,1,32], index: 5, kind: input, shape index: {}]   ;;  %s4074_s6 = inlined_call_operand.hbm [shape: f32[2,2,1,32], index: 6, kind: input, shape index: {}]   ;;  %s4075_s7 = inlined_call_operand.vmem [shape: bf16[2,2,32,64], index: 7, kind: input, shape index: {}]   ;;  %s4076_s8 = inlined_call_operand.hbm [shape: f32[2,2,1,64], index: 8, kind: input, shape index: {}]   ;;  %s4077_s9 = inlined_call_operand.vmem [shape: bf16[2,2,64,32], index: 9, kind: input, shape index: {}]   ;;  %s4078_s10 = inlined_call_operand.hbm [shape: f32[2,2,1,32], index: 10, kind: input, shape index: {}]   ;;  %s4079_s11 = inlined_call_operand.vmem [shape: f32[2,2,1,32], index: 11, kind: input, shape index: {}]   ;;  %s4080_s12 = inlined_call_operand.hbm [shape: f32[2,2,1,32], index: 12, kind: input, shape index: {}]   ;;  %s4081_s13 = inlined_call_operand.hbm [shape: f32[2,16,32], index: 13, kind: output, shape index: {}]  }
   0x1   :  { %4106 = sst [smem:[#allocation32_spill]] %s4068_s0 }
   0x2   :  { %4107 = sst [smem:[#allocation33_spill]] %s4069_s1 }
   0x3   :  { %4108 = sst [smem:[#allocation34_spill]] %s4070_s2 }
   0x4   :  { %4109 = sst [smem:[#allocation35_spill]] %s4071_s3 }
   0x5   :  { %4110 = sst [smem:[#allocation36_spill]] %s4072_s4 }
   0x6   :  { %4111 = sst [smem:[#allocation37_spill]] %s4073_s5 }
   0x7   :  { %4112 = sst [smem:[#allocation38_spill]] %s4074_s6 }
   0x8   :  { %4113 = sst [smem:[#allocation39_spill]] %s4075_s7 }
   0x9   :  { %4114 = sst [smem:[#allocation40_spill]] %s4076_s8 }
   0xa   :  { %4115 = sst [smem:[#allocation41_spill]] %s4077_s9 }
   0xb   :  { %4116 = sst [smem:[#allocation42_spill]] %s4078_s10 }
   0xc   :  { %4117 = sst [smem:[#allocation43_spill]] %s4079_s11 }
   0xd   :  { %4118 = sst [smem:[#allocation44_spill]] %s4080_s12 }
   0xe   :  { %4119 = sst [smem:[#allocation45_spill]] %s4081_s13 }
   0xf   :  { %18 = vsyncpa [#allocation4], 0 }
  0x10   :  { %20 = vsyncpa [#allocation4 + $0x1], 0 }
  0x11   :  { %21 = vsyncpa [#allocation7], 0 }
  0x12   :  { %23 = vsyncpa [#allocation7 + $0x1], 0 }
  0x13   :  { %24 = vsyncpa [#allocation10], 0 }
  0x14   :  { %26 = vsyncpa [#allocation10 + $0x1], 0 }
  0x15   :  { %27 = vsyncpa [#allocation5], 0 }
  0x16   :  { %29 = vsyncpa [#allocation5 + $0x1], 0  ;;  %s3376_s25 = smov 0   ;;  %s3378_s26 = smov 0  }
  0x17   :  { %s3380_s27 = smov 0   ;;  %s3382_s28 = smov 0  }
  0x18   :  { %s3384_s29 = smov 0   ;;  %s3386_s30 = smov 0  }
  0x19   :  { %s3388_s14 = smov 0   ;;  %s3390_s15 = smov 0  }
  0x1a   :  { %s3392_s16 = smov 0   ;;  %s3394_s17 = smov 0  }
  0x1b   :  { %s3396_s18 = smov 0  }
  0x1c LB: > { %4120 = sst [smem:[#allocation17_spill]] %s3241_s26  ;;  %s3432_s19 = sadd.s32 4294967295, %s3277_s18   ;;  %s3277_s18 = sphi %s3396_s18, %s35_s18   ;;  %s3273_s17 = sphi %s3394_s17, %s4199_s17   ;;  %s3269_s16 = sphi %s3392_s16, %s4198_s16   ;;  %s3265_s15 = sphi %s3390_s15, %s4197_s15   ;;  %s3261_s14 = sphi %s3388_s14, %s4196_s14   ;;  %s3257_s30 = sphi %s3386_s30, %s4195_s30   ;;  %s3253_s29 = sphi %s3384_s29, %s4194_s29   ;;  %s3249_s28 = sphi %s3382_s28, %s4193_s28   ;;  %s3245_s27 = sphi %s3380_s27, %s4192_s27   ;;  %s3241_s26 = sphi %s3378_s26, %s4191_s26   ;;  %s3237_s25 = sphi %s3376_s25, %s4190_s25  }
  0x1d   : > { %4121 = sst [smem:[#allocation18_spill]] %s3245_s27  ;;  %s2535_s20 = sadd.s32 4294967294, %s3277_s18  }
  0x1e   : > { %4122 = sst [smem:[#allocation19_spill]] %s3249_s28  ;;  %s47_s21 = sadd.s32 1, %s3269_s16 }
  0x1f   : > { %4123 = sst [smem:[#allocation20_spill]] %s3253_s29  ;;  %s54_s22 = sadd.s32 1, %s3273_s17 }
  0x20   : > { %4124 = sst [smem:[#allocation21_spill]] %s3257_s30  ;;  %p48_p0 = scmp.ge.s32.totalorder %s47_s21, 2 }
  0x21   : > { %4125 = sst [smem:[#allocation22_spill]] %s3261_s14  ;;  %s63_s23 = sadd.s32 1, %s3257_s30 }
  0x22   : > { %4126 = sst [smem:[#allocation23_spill]] %s3269_s16  ;;  %p70_p1 = scmp.ne.s32.totalorder %s3257_s30, %s3253_s29 }
  0x23   : > { %4127 = sst [smem:[#allocation24_spill]] %s3273_s17  ;;  %p71_p2 = scmp.eq.s32.totalorder %s3277_s18, 0 }
  0x24   : > { %4128 = sst [smem:[#allocation25_spill]] %s3277_s18  ;;  %s4201_s21 = smov (%p48_p0, %s47_s21), 0 }
  0x25   : > { %4129 = sst [smem:[#allocation26_spill]] %s4201_s21  ;;  %s4203_s22 = smov (!%p48_p0, %s54_s22), %s3273_s17 }
  0x26   : > { %p3449_p3 = por %p71_p2, %p70_p1  ;;  %p4084_p4 = scmp.ne.s32.totalorder %s3253_s29, %s3249_s28 }
  0x27   : > { %p56_p5 = scmp.ge.s32.totalorder %s4203_s22, 2  ;;  %p77_p6 = scmp.eq.s32.totalorder %s3432_s19, 0 }
  0x28   : > { %s227_s13 = ssub.s32 %s3269_s16, %s4201_s21  ;;  %s231_s9 = sadd.s32 1, %s3245_s27 }
  0x29   : > { %s4205_s22 = smov (%p56_p5, %s4203_s22), 0  ;;  %p3466_p7 = por %p77_p6, %p4084_p4 }
  0x2a   : > { %4131 = sst [smem:[#allocation27_spill]] %s4205_s22  ;;  %p238_p8 = scmp.ne.s32.totalorder %s3245_s27, %s3241_s26 }
  0x2b   : > { %s4132_s11 = scalar_select %p3466_p7, 1, 0 }
  0x2c   : > { %s59_s7 = ssub.s32 %s3273_s17, %s4205_s22  ;;  %p244_p9 = scmp.ne.s32.totalorder %s3241_s26, %s3237_s25 }
  0x2d   : > { %p61_p10 = scmp.eq.s32.totalorder %s59_s7, 0  ;;  %s228_s21 = sor.u32 %s227_s13, %s59_s7 }
  0x2e   : > { %p229_p11 = scmp.eq.s32.totalorder %s228_s21, 0  ;;  %p3478_p12 = por %p238_p8, %p71_p2 }
  0x2f   : > { %s3483_s3 = scalar_select %p61_p10, %s3257_s30, %s63_s23  }
  0x30   : > { %s3486_s1 = scalar_select %p229_p11, %s3245_s27, %s231_s9  }
  0x31   : > { %4134 = sst [smem:[#allocation28_spill]] %s3483_s3  ;;  %p3490_p13 = por %p244_p9, %p77_p6 }
  0x32   : > { %4135 = sst [smem:[#allocation29_spill]] %s3486_s1  ;;  %p438_p0 = scmp.eq.s32.totalorder %s3432_s19, 3 }
  0x33   : > { %s4136_s4 = scalar_select %p3490_p13, 1, 0 }
  0x34   : > { %p444_p5 = scmp.eq.s32.totalorder %s2535_s20, 3  ;;  %p3498_p4 = por %p438_p0, %p70_p1 }
  0x35   : > { %p2821_p2 = scmp.lt.s32.totalorder %s3277_s18, 4  ;;  %p4139_p8 = scmp.ne.s32.totalorder %s3253_s29, %s3249_s28 }
  0x36   : > { %s4137_s7 = scalar_select %p3498_p4, 1, 0 }
  0x37   : > { %p3506_p10 = por %p444_p5, %p4139_p8  ;;  %p3513_p6 = pnand %p2821_p2, %p3449_p3 }
  0x38   : > { %4138 = sst [smem:[#allocation30_spill]] %s4137_s7  ;;  %s3518_s20 = sand.u32 1, %s3245_s27  }
  0x39   : > { %s4140_s9 = scalar_select %p3506_p10, 1, 0 }
  0x3a   : > { %s4142_s25 = scalar_select %p3513_p6, 1, 0 }
  0x3b   : > { %4141 = sst [smem:[#allocation31_spill]] %s4140_s9  ;;  %s2540_s21 = sshll.u32 %s3273_s17, 1 }
  0x3c   : > { %s549_s23 = sadd.s32 %s3269_s16, %s2540_s21  ;;  %s544_s22 = scalar_lea.vmem [#allocation6], %s3518_s20 }
  0x3d   : > { %s553_s3 = sshll.u32 %s544_s22, 4  ;;  %s3523_s1 = sshll.u32 %s549_s23, 4  ;;  %s3525_s3 = int_to_ptr.vmem [resolvable:$true] %s553_s3 }
  0x3e   : > { %s4143_s6 = sld [smem:[#allocation38_spill]]  ;;  %p3535_p1 = pnand %p2821_p2, %p3478_p12 }
  0x3f   : > { %s4145_s22 = sand.u32 1, %s3277_s18  }
  0x40   : > { %s4144_s13 = scalar_select %p3535_p1, 1, 0 }
  0x41   : > { %s3543_s21 = scalar_lea.sflag [#allocation7], %s4145_s22  ;;  %p3549_p0 = pneg %p3535_p1 }
  0x44   : > { %s3531_s24 = scalar_lea.hbm %s4143_s6, %s3523_s1  ;;  %s3002_s16 = scalar_lea.hbm %s4143_s6, 64 }
  0x45   : > { %s2997_s23 = scalar_lea.hbm %s3531_s24, 16  ;;  %p3003_p2 = scmp.lt.u32.totalorder %s3531_s24, %s4143_s6 }
  0x46   : > { %p2998_p11 = scmp.ne.s32.totalorder %s3531_s24, %s2997_s23  ;;  %p3004_p8 = scmp.lt.u32.totalorder %s3002_s16, %s2997_s23 }
  0x47   : > { %p3006_p9 = scmp.lt.u32.totalorder %s2997_s23, %s3531_s24 }
  0x48   : > { %p3000_p5 = pnand %p3549_p0, %p2998_p11  ;;  %p3005_p3 = por %p3004_p8, %p3003_p2 }
  0x4a   : > { %p3001_p12 = pneg %p3000_p5  ;;  %p3007_p10 = por %p3006_p9, %p3005_p3 }
  0x4c   : > { %p3008_p4 = pnand %p3007_p10, %p3001_p12 }
  0x4e   : > { %3011 = shalt.err (!%p3008_p4)
}
  0x4f   : > { %s3012_s22 = scalar_lea.vmem %s3525_s3, 16  ;;  %s3279_s5 = smov [#allocation6]  }
  0x50   : > { %p3013_p11 = scmp.ne.s32.totalorder %s3525_s3, %s3012_s22  ;;  %s3017_s9 = sshll.u32 %s3279_s5, 4  ;;  %s3018_s9 = int_to_ptr.vmem [resolvable:$false] %s3017_s9 }
  0x51   : > { %s3019_s27 = scalar_lea.vmem %s3018_s9, 32  ;;  %p3020_p7 = scmp.lt.s32.totalorder %s3525_s3, %s3018_s9 }
  0x52   : > { %p3015_p5 = pnand %p3013_p11, %p3549_p0  ;;  %p3021_p6 = scmp.lt.s32.totalorder %s3019_s27, %s3012_s22 }
  0x54   : > { %p3016_p13 = pneg %p3015_p5  ;;  %p3022_p2 = por %p3021_p6, %p3020_p7 }
  0x56   : > { %p3023_p8 = pnand %p3022_p2, %p3016_p13 }
  0x58   : > { %3026 = shalt.err (!%p3023_p8)
}
  0x59   : > { %2807 = dma.hbm_to_vmem [thread:$0]  (!%p3535_p1), %s3531_s24, 16, %s3525_s3, %s3543_s21  }
  0x5a   : > { %p4147_p4 = scmp.lt.s32.totalorder %s3277_s18, 5  ;;  %p4148_p10 = scmp.ge.s32.totalorder %s3277_s18, 1 }
  0x5b   : > { %s4150_s10 = sld [smem:[#allocation42_spill]]  ;;  %s606_s5 = scalar_lea.vmem [#allocation9], %s3518_s20 }
  0x5c   : > { %p3577_p3 = pnand %p4148_p10, %p4147_p4  ;;  %s615_s9 = sshll.u32 %s606_s5, 4  ;;  %s616_s9 = int_to_ptr.vmem [resolvable:$true] %s615_s9 }
  0x5d   : > { %s4151_s27 = sand.u32 1, %s3277_s18  }
  0x5e   : > { %s4149_s16 = scalar_select %p3577_p3, 1, 0 }
  0x5f   : > { %s3590_s3 = scalar_lea.sflag [#allocation10], %s4151_s27 }
  0x61   : > { %s3585_s22 = scalar_lea.hbm %s4150_s10, %s3523_s1  ;;  %s3032_s7 = scalar_lea.hbm %s4150_s10, 64 }
  0x62   : > { %s3027_s24 = scalar_lea.hbm %s3585_s22, 16  ;;  %p3033_p9 = scmp.lt.u32.totalorder %s3585_s22, %s4150_s10 }
  0x63   : > { %p3028_p7 = scmp.ne.s32.totalorder %s3585_s22, %s3027_s24  ;;  %p3034_p12 = scmp.lt.u32.totalorder %s3032_s7, %s3027_s24 }
  0x64   : > { %p3036_p5 = scmp.lt.u32.totalorder %s3027_s24, %s3585_s22 }
  0x65   : > { %p3030_p13 = pnand %p3028_p7, %p3549_p0  ;;  %p3035_p11 = por %p3034_p12, %p3033_p9 }
  0x67   : > { %p3031_p6 = pneg %p3030_p13  ;;  %p3037_p2 = por %p3036_p5, %p3035_p11 }
  0x69   : > { %p3038_p8 = pnand %p3037_p2, %p3031_p6 }
  0x6b   : > { %3041 = shalt.err (!%p3038_p8)
}
  0x6c   : > { %s3042_s5 = scalar_lea.vmem %s616_s9, 16  ;;  %s3280_s27 = smov [#allocation9]  }
  0x6d   : > { %p3043_p4 = scmp.ne.s32.totalorder %s616_s9, %s3042_s5  ;;  %s3047_s18 = sshll.u32 %s3280_s27, 4  ;;  %s3048_s18 = int_to_ptr.vmem [resolvable:$false] %s3047_s18 }
  0x6e   : > { %s3049_s2 = scalar_lea.vmem %s3048_s18, 32  ;;  %p3050_p13 = scmp.lt.s32.totalorder %s616_s9, %s3048_s18 }
  0x6f   : > { %p3045_p10 = pnand %p3043_p4, %p3549_p0  ;;  %p3051_p3 = scmp.lt.s32.totalorder %s3049_s2, %s3042_s5 }
  0x71   : > { %p3046_p7 = pneg %p3045_p10  ;;  %p3052_p1 = por %p3051_p3, %p3050_p13 }
  0x73   : > { %p3053_p9 = pnand %p3052_p1, %p3046_p7 }
  0x75   : > { %3056 = shalt.err (!%p3053_p9)
}
  0x76   : > { %p4152_p12 = scmp.ne.s32.totalorder %s4144_s13, 0  ;;  %s464_s6 = sand.u32 1, %s3257_s30  }
  0x77   : > { %s2538_s14 = sshll.u32 %s464_s6, 4  ;;  %s2539_s24 = sshll.u32 %s3273_s17, 7 }
  0x78   : > { %2813 = dma.hbm_to_vmem [thread:$0]  (!%p4152_p12), %s3585_s22, 16, %s616_s9, %s3590_s3  }
  0x79   : > { %s4153_s0 = sld [smem:[#allocation32_spill]]  ;;  %s468_s5 = scalar_lea.vmem [#allocation3], %s2538_s14 }
  0x7a   : > { %s477_s27 = sshll.u32 %s468_s5, 4  ;;  %s3619_s2 = scalar_lea.sflag [#allocation4], %s464_s6  ;;  %s3617_s27 = int_to_ptr.vmem [resolvable:$true] %s477_s27 }
  0x7b   : > { %p4154_p3 = scmp.ne.s32.totalorder %s4142_s25, 0 }
  0x7d   : > { %p3059_p6 = pneg %p4154_p3 }
  0x7f   : > { %s3615_s18 = scalar_lea.hbm %s4153_s0, %s2539_s24  ;;  %s3062_s24 = scalar_lea.hbm %s4153_s0, 512 }
  0x80   : > { %s3057_s10 = scalar_lea.hbm %s3615_s18, 256  ;;  %p3063_p2 = scmp.lt.u32.totalorder %s3615_s18, %s4153_s0 }
  0x81   : > { %p3058_p1 = scmp.ne.s32.totalorder %s3615_s18, %s3057_s10  ;;  %p3064_p8 = scmp.lt.u32.totalorder %s3062_s24, %s3057_s10 }
  0x82   : > { %p3066_p10 = scmp.lt.u32.totalorder %s3057_s10, %s3615_s18 }
  0x83   : > { %p3060_p11 = pnand %p3059_p6, %p3058_p1  ;;  %p3065_p4 = por %p3064_p8, %p3063_p2 }
  0x85   : > { %p3061_p5 = pneg %p3060_p11  ;;  %p3067_p7 = por %p3066_p10, %p3065_p4 }
  0x87   : > { %p3068_p13 = pnand %p3067_p7, %p3061_p5 }
  0x89   : > { %3071 = shalt.err (!%p3068_p13)
}
  0x8a   : > { %s3072_s6 = scalar_lea.vmem %s3617_s27, 256  ;;  %s3281_s14 = smov [#allocation3]  }
  0x8b   : > { %p3073_p9 = scmp.ne.s32.totalorder %s3617_s27, %s3072_s6  ;;  %s3077_s5 = sshll.u32 %s3281_s14, 4  ;;  %s3078_s5 = int_to_ptr.vmem [resolvable:$false] %s3077_s5 }
  0x8c   : > { %s3079_s22 = scalar_lea.vmem %s3078_s5, 512  ;;  %p3080_p12 = scmp.lt.s32.totalorder %s3617_s27, %s3078_s5 }
  0x8d   : > { %p3075_p1 = pnand %p3073_p9, %p3059_p6  ;;  %p3081_p2 = scmp.lt.s32.totalorder %s3079_s22, %s3072_s6 }
  0x8f   : > { %p3076_p11 = pneg %p3075_p1  ;;  %p3082_p8 = por %p3081_p2, %p3080_p12 }
  0x91   : > { %p3083_p4 = pnand %p3082_p8, %p3076_p11 }
  0x93   : > { %3086 = shalt.err (!%p3083_p4)
}
  0x94   : > { %s3282_s10 = smov 256   ;;  %s3283_s9 = smov 128  }
  0x95   : > { %s3284_s24 = smov 8   ;;  %s4155_s8 = sld [smem:[#allocation40_spill]] }
  0x96   : > { %2804 = dma.hbm_to_vmem [thread:$0]  (!%p4154_p3), %s3615_s18, 256, %s3617_s27, %s3619_s2, %s3282_s10, %s3283_s9, %s3284_s24  }
  0x97   : > { %s575_s14 = scalar_lea.vmem [#allocation8], %s3518_s20  ;;  %s4156_s12 = sld [smem:[#allocation44_spill]] }
  0x98   : > { %s584_s5 = sshll.u32 %s575_s14, 4  ;;  %s585_s5 = int_to_ptr.vmem [resolvable:$true] %s584_s5 }
  0x9b   : > { %s3651_s6 = scalar_lea.hbm %s4155_s8, %s3523_s1  ;;  %s3092_s27 = scalar_lea.hbm %s4155_s8, 64 }
  0x9c   : > { %s3087_s30 = scalar_lea.hbm %s3651_s6, 16  ;;  %p3093_p5 = scmp.lt.u32.totalorder %s3651_s6, %s4155_s8 }
  0x9d   : > { %s3658_s17 = scalar_lea.hbm %s4156_s12, %s3523_s1  ;;  %p3088_p12 = scmp.ne.s32.totalorder %s3651_s6, %s3087_s30 }
  0x9e   : > { %p3094_p10 = scmp.lt.u32.totalorder %s3092_s27, %s3087_s30  ;;  %p3096_p13 = scmp.lt.u32.totalorder %s3087_s30, %s3651_s6 }
  0x9f   : > { %p3090_p3 = pnand %p3088_p12, %p3549_p0 }
  0xa0   : > { %p3095_p7 = por %p3094_p10, %p3093_p5 }
  0xa1   : > { %p3091_p6 = pneg %p3090_p3 }
  0xa2   : > { %p3097_p9 = por %p3096_p13, %p3095_p7 }
  0xa4   : > { %p3098_p1 = pnand %p3097_p9, %p3091_p6 }
  0xa6   : > { %3101 = shalt.err (!%p3098_p1)
}
  0xa7   : > { %s3102_s0 = scalar_lea.vmem %s585_s5, 16  ;;  %s3285_s1 = smov [#allocation8]  }
  0xa8   : > { %p3103_p11 = scmp.ne.s32.totalorder %s585_s5, %s3102_s0  ;;  %s3107_s9 = sshll.u32 %s3285_s1, 4  ;;  %s3108_s9 = int_to_ptr.vmem [resolvable:$false] %s3107_s9 }
  0xa9   : > { %s3109_s24 = scalar_lea.vmem %s3108_s9, 32  ;;  %p3110_p4 = scmp.lt.s32.totalorder %s585_s5, %s3108_s9 }
  0xaa   : > { %p3105_p2 = pnand %p3103_p11, %p3549_p0  ;;  %p3111_p12 = scmp.lt.s32.totalorder %s3109_s24, %s3102_s0 }
  0xac   : > { %p3106_p8 = pneg %p3105_p2  ;;  %p3112_p3 = por %p3111_p12, %p3110_p4 }
  0xae   : > { %p3113_p5 = pnand %p3112_p3, %p3106_p8 }
  0xb0   : > { %3116 = shalt.err (!%p3113_p5)
}
  0xb1   : > { %p4157_p10 = scmp.ne.s32.totalorder %s4144_s13, 0  ;;  %s635_s30 = scalar_lea.vmem [#allocation11], %s3518_s20 }
  0xb2   : > { %s644_s7 = sshll.u32 %s635_s30, 4  ;;  %s3117_s23 = scalar_lea.hbm %s3658_s17, 16  ;;  %s645_s7 = int_to_ptr.vmem [resolvable:$true] %s644_s7 }
  0xb3   : > { %2810 = dma.hbm_to_vmem [thread:$0]  (!%p4157_p10), %s3651_s6, 16, %s585_s5, %s3543_s21  }
  0xb4   : > { %p3118_p6 = scmp.ne.s32.totalorder %s3658_s17, %s3117_s23  ;;  %s3122_s25 = scalar_lea.hbm %s4156_s12, 64 }
  0xb5   : > { %p3123_p9 = scmp.lt.u32.totalorder %s3658_s17, %s4156_s12  ;;  %p3124_p1 = scmp.lt.u32.totalorder %s3122_s25, %s3117_s23 }
  0xb6   : > { %p3120_p7 = pnand %p3118_p6, %p3549_p0  ;;  %p3126_p2 = scmp.lt.u32.totalorder %s3117_s23, %s3658_s17 }
  0xb7   : > { %p3125_p11 = por %p3124_p1, %p3123_p9 }
  0xb8   : > { %p3121_p13 = pneg %p3120_p7 }
  0xb9   : > { %p3127_p8 = por %p3126_p2, %p3125_p11 }
  0xbb   : > { %p3128_p4 = pnand %p3127_p8, %p3121_p13 }
  0xbd   : > { %3131 = shalt.err (!%p3128_p4)
}
  0xbe   : > { %s3132_s20 = scalar_lea.vmem %s645_s7, 16  ;;  %s3286_s21 = smov [#allocation11]  }
  0xbf   : > { %p3133_p12 = scmp.ne.s32.totalorder %s645_s7, %s3132_s20  ;;  %s3137_s6 = sshll.u32 %s3286_s21, 4  ;;  %s3138_s6 = int_to_ptr.vmem [resolvable:$false] %s3137_s6 }
  0xc0   : > { %s3139_s5 = scalar_lea.vmem %s3138_s6, 32  ;;  %p3140_p6 = scmp.lt.s32.totalorder %s645_s7, %s3138_s6 }
  0xc1   : > { %p3135_p3 = pnand %p3133_p12, %p3549_p0  ;;  %p3141_p7 = scmp.lt.s32.totalorder %s3139_s5, %s3132_s20 }
  0xc3   : > { %p3136_p5 = pneg %p3135_p3  ;;  %p3142_p10 = por %p3141_p7, %p3140_p6 }
  0xc5   : > { %p3143_p1 = pnand %p3142_p10, %p3136_p5 }
  0xc7   : > { %3146 = shalt.err (!%p3143_p1)
}
  0xc8   : > { %p4158_p9 = scmp.ne.s32.totalorder %s4144_s13, 0  ;;  %p4159_p13 = scmp.ne.s32.totalorder %s4149_s16, 0 }
  0xc9   : > { %s3700_s28 = sand.u32 (!%p4159_p13), 1, %s3253_s29   ;;  %p4160_p0 = scmp.ne.s32.totalorder (!%p4159_p13), %s4132_s11, 0 }
  0xca   : > { %2816 = dma.hbm_to_vmem [thread:$0]  (!%p4158_p9), %s3658_s17, 16, %s645_s7, %s3590_s3  }
  0xcb   : > { %653 = sbr.rel (%p4159_p13) target bundleno = 4383 (0x111f), region = 72  ;;  %s4103_s2 = sshll.u32 (!%p4159_p13), %s3700_s28, 4 }
  0xcc   : > { %s656_s10 = scalar_lea.sflag (!%p4159_p13), [#allocation4], %s3700_s28  ;;  %s3706_s0 = scalar_lea.vmem (!%p4159_p13), [#allocation3], %s4103_s2 }
  0xd2   : > { %3220 = dma.done.wait (%p4160_p0), %s656_s10, 256  }
  0xd3   : > { %3222 = vsyncadd (%p4160_p0), %s656_s10, 4294967040  ;;  %s664_s17 = sand.u32 1, %s3432_s19   ;;  %s3714_s13 = sand.u32 1, %s3241_s26  }
  0xd4   : > { %s665_s16 = scalar_lea.sflag [#allocation7], %s664_s17  ;;  %p4161_p10 = scmp.ne.s32.totalorder %s4136_s4, 0 }
  0xd6   : > { %3224 = dma.done.wait (%p4161_p10), %s665_s16, 32  }
  0xd7   : > { %3226 = vsyncadd (%p4161_p10), %s665_s16, 4294967264  ;;  %s681_s11 = scalar_lea.sflag [#allocation10], %s664_s17 }
  0xd8   : > { %3228 = dma.done.wait (%p4161_p10), %s681_s11, 32  }
  0xd9   : > { %3230 = vsyncadd (%p4161_p10), %s681_s11, 4294967264  ;;  %s4162_s19 = sld [smem:[#allocation22_spill]]  ;;  %p815_p11 = scmp.lt.s32.totalorder %s3265_s15, 1 }
  0xda   : > { %s4165_s9 = sld [smem:[#allocation33_spill]]  ;;  %s4166_s2 = sld [smem:[#allocation35_spill]] }
  0xdb   : > { %s816_s24 = scalar_select %p815_p11, %s3265_s15, 1 }
  0xdc   : > { %s4170_s1 = sld [smem:[#allocation41_spill]]  ;;  %s691_s12 = scalar_lea.vmem [#allocation11], %s3714_s13 }
  0xdd   : > { %s2552_s7 = sshll.u32 %s816_s24, 3  ;;  %s2554_s23 = sshll.u32 %s816_s24, 1 }
  0xde   : > { %s2564_s5 = sshll.u32 %s816_s24, 4 }
  0xdf   : > { %p817_p2 = scmp.lt.s32.totalorder %s4162_s19, 1  ;;  %p2567_p8 = scmp.ne.s32.totalorder %s4162_s19, 0 }
  0xe0   : > { %v885_v0 = vld [vmem:[%s3706_s0] sm:$0xff] (!%p2567_p8)  ;;  %vm887_vm0 = vcmask (!%p2567_p8), 261120   ;;  %v886_v1 = vld [vmem:[%s3706_s0 + $0x8] sm:$0xff] (!%p2567_p8) }
  0xe1   : > { %s818_s30 = scalar_select %p817_p2, %s4162_s19, 1 }
  0xe2   : > { %888 = vst.msk [vmem:[#allocation2] sm:$0xff] (!%p2567_p8), %vm887_vm0, %v885_v0  ;;  %889 = vst.msk [vmem:[#allocation2 + $0x8] sm:$0xff] (!%p2567_p8), %vm887_vm0, %v886_v1 }
  0xe3   : > { %s2551_s14 = sshll.u32 %s818_s30, 2  ;;  %s3731_s22 = sadd.s32 %s2554_s23, %s818_s30 }
  0xe4   : > { %s821_s4 = sadd.s32 %s2552_s7, %s2551_s14  ;;  %s4167_s14 = sld [smem:[#allocation37_spill]] }
  0xe5   : > { %s2553_s21 = sshll.u32 %s821_s4, 2  ;;  %s4168_s4 = sld [smem:[#allocation39_spill]] }
  0xe6   : > { %s823_s23 = scalar_lea.vmem %s4165_s9, %s2553_s21  ;;  %s3747_s8 = scalar_lea.vmem %s4166_s2, %s2553_s21 }
  0xe7   : > { %s2563_s6 = sshll.u32 %s818_s30, 3  ;;  %s4169_s9 = sld [smem:[#allocation43_spill]] }
  0xe8   : > { %s869_s10 = sadd.s32 %s2564_s5, %s2563_s6  ;;  %s4171_s7 = sshll.u32 %s3700_s28, 4 }
  0xe9   : > { %s2565_s20 = sshll.u32 %s869_s10, 2  ;;  %884 = sbr.rel (%p2567_p8) target bundleno = 240 (0xf0), region = 96 }
  0xea   : > { %s853_s29 = scalar_lea.vmem %s4167_s14, %s3731_s22  ;;  %s3765_s26 = scalar_lea.vmem %s4170_s1, %s2565_s20 }
  0xeb   : > { %s3756_s27 = scalar_lea.vmem %s4168_s4, %s2553_s21  ;;  %s3770_s14 = scalar_lea.vmem [#allocation12], %s4171_s7 }
  0xed   : > { %s878_s11 = scalar_lea.vmem %s4169_s9, %s3731_s22 }
  0xf0 PF: > { %v2947_v2 = vld [vmem:[%s823_s23] sm:$0xff]   ;;  %v3287_v3 = vmov 0.0   ;;  %v2948_v4 = vld [vmem:[%s823_s23 + $0x8] sm:$0xff]   ;;  %vm3288_vm1 = vmmov 0   ;;  %vm916_vm2 = vcmask 261120   ;;  %s4172_s24 = sld [smem:[#allocation34_spill]] }
  0xf1   : > { %2657 = vmatprep.subr.bf16.mxu0 %v3287_v3  ;;  %2665 = vmatprep.subr.bf16.mxu1 %v3287_v3  ;;  %v3779_v5 = vld [vmem:[#allocation2] sm:$0xff]  ;;  %v3781_v6 = vld [vmem:[#allocation2 + $0x8] sm:$0xff]  ;;  %s3289_s20 = smov 96   ;;  %vm966_vm3 = vcmask 64512   ;;  %s3290_s21 = smov 64   ;;  %vm1091_vm4 = vcmask 1043456  }
  0xf2   : > { %2658 = vmatpush3.bf16.msra.mxu0 %v2947_v2  ;;  %2661 = vmatprep.mubr.msk.bf16.mxu0 %vm3288_vm1, %v3287_v3  ;;  %v892_v7 = vpack.c.bf16 %v3781_v6, %v3779_v5  ;;  %s3291_s17 = smov 88   ;;  %s3292_s23 = smov 120   ;;  %vm1869_vm5 = vcmask 130048   ;;  %vm1872_vm6 = vcmask 195584   ;;  %vm2100_vm7 = vcmask 523264  }
  0xf3   : > { %2659 = vmatprep.subr.bf16.mxu0 %v3287_v3  ;;  %2667 = vmatprep.mubr.msk.bf16.mxu1 %vm3288_vm1, %v3287_v3  ;;  %s3293_s25 = smov 56   ;;  %s3294_s18 = smov 80  }
  0xf4   : > { %s3295_s4 = smov 112   ;;  %s3296_s6 = smov 48  }
  0xf5   : > { %s3297_s5 = smov 72   ;;  %s3298_s10 = smov 104  }
  0xf6   : > { %2660 = vmatpush3.bf16.msra.mxu0 %v2948_v4  ;;  %s4173_s30 = scalar_lea.vmem %s4172_s24, %s3731_s22  ;;  %s3299_s16 = smov 40  }
  0xf7   : > { %2671 = vmatprep.subr.bf16.mxu0 %v3287_v3  ;;  %v2568_v8 = vld [vmem:[%s4173_s30] ss:$0 sm:$0xff]  ;;  %s3300_s9 = smov 8   ;;  %s3301_s3 = smov 16  }
  0xf8   : > { %s3302_s2 = smov 24   ;;  %s4174_s7 = sld [smem:[#allocation36_spill]] }
  0xf9   : > { %2662 = vmatmul.mubr.msk.bf16.vlgmr.msra.gmra.mrb[0].mxu0 %vm916_vm2, %v892_v7  ;;  %s4177_s30 = scalar_lea.vmem [#allocation6], %s3714_s13 }
  0xfa   : > { %2673 = vmatprep.mubr.msk.bf16.mxu0 %vm3288_vm1, %v3287_v3 }
  0xfe   : > { %s4175_s0 = scalar_lea.vmem %s4174_s7, %s3731_s22 }
 0x1cc   : > { %v954_v9 = vpop.f32.mrb[0].mxu0 }
 0x1cd   : > { %v955_v10 = vadd.f32 %v2568_v8, %v954_v9  ;;  %v2663_v11 = vpop.f32.mrb[1].mxu0 }
 0x1ce   : > { %v957_v12 = vpop.f32.mrb[2].mxu0 }
 0x1cf   : > { %v3797_v13 = vpack.c.bf16 %v955_v10, %v955_v10  ;;  %v958_v14 = vadd.f32 %v2568_v8, %v957_v12  ;;  %v2664_v15 = vpop.f32.mrb[3].mxu0 }
 0x1d1   : > { %964 = vrot.lane.b32.xlu0 %v3797_v13, %s3289_s20  ;;  %v3800_v16 = vpack.c.bf16 %v958_v14, %v958_v14 }
 0x1d5   : > { %1014 = vrot.lane.b32.xlu0 %v3800_v16, %s3289_s20  ;;  %s4179_s20 = scalar_lea.vmem [#allocation9], %s3714_s13 }
 0x243   : > { %v965_v17 = vpop.permute.xlu0 %964 }
 0x244   : > { %v971_v18 = vsel %vm966_vm3, %v965_v17, 0 }
 0x245   : > { %2666 = vmatpush3.bf16.xpose.msra.mxu1 %v971_v18 }
 0x246   : > { %2677 = vmatprep.subr.bf16.mxu1 %v3287_v3 }
 0x247   : > { %v1015_v19 = vpop.permute.xlu0 %1014 }
 0x248   : > { %v1020_v20 = vsel %vm966_vm3, %v1015_v19, 0 }
 0x249   : > { %2672 = vmatpush3.bf16.xpose.msra.mxu0 %v1020_v20 }
 0x24a   : > { %2683 = vmatprep.subr.bf16.mxu0 %v3287_v3 }
 0x24c   : > { %2668 = vmatmul.mubr.msk.bf16.vlgmr.msra.gmra.mrb[0].mxu1 %vm966_vm3, %v3797_v13 }
 0x24d   : > { %2679 = vmatprep.mubr.msk.bf16.mxu1 %vm3288_vm1, %v3287_v3 }
 0x250   : > { %2674 = vmatmul.mubr.msk.bf16.vlgmr.msra.gmra.mrb[4].mxu0 %vm966_vm3, %v3800_v16 }
 0x251   : > { %2685 = vmatprep.mubr.msk.bf16.mxu0 %vm3288_vm1, %v3287_v3 }
 0x31f   : > { %v1007_v21 = vpop.f32.mrb[0].mxu1 }
 0x320   : > { %v2669_v22 = vpop.f32.mrb[1].mxu1  ;;  %v1062_v23 = vsel %vm966_vm3, %v1007_v21, -inf }
 0x321   : > { %1063 = vmax.xlane.f32.xlu1 %v1062_v23  ;;  %v1010_v24 = vpop.f32.mrb[2].mxu1 }
 0x322   : > { %v2670_v25 = vpop.f32.mrb[3].mxu1 }
 0x323   : > { %v1056_v26 = vpop.f32.mrb[4].mxu0 }
 0x324   : > { %v2675_v27 = vpop.f32.mrb[5].mxu0  ;;  %v1065_v28 = vsel %vm966_vm3, %v1056_v26, -inf }
 0x325   : > { %1066 = vmax.xlane.f32.xlu1 %v1065_v28  ;;  %v1059_v29 = vpop.f32.mrb[6].mxu0 }
 0x326   : > { %v2676_v30 = vpop.f32.mrb[7].mxu0 }
 0x336   : > { %1086 = vrot.lane.b32.xlu1 %v3797_v13, %s3290_s21 }
 0x33a   : > { %1135 = vrot.lane.b32.xlu1 %v3800_v16, %s3290_s21 }
 0x33e   : > { %1185 = vrot.lane.b32.xlu1 %v3797_v13, %s3291_s17 }
 0x3ae   : > { %v1064_v31 = vpop.xlane.xlu1 %1063 }
 0x3af   : > { %v1068_v32 = vsub.f32 %v1007_v21, %v1064_v31 }
 0x3b1   : > { %v1070_v33 = vmul.f32 1.442695, %v1068_v32 }
 0x3b2   : > { %v1067_v34 = vpop.xlane.xlu1 %1066 }
 0x3b3   : > { %2957 = vpow2.f32 %v1070_v33  ;;  %v1069_v35 = vsub.f32 %v1056_v26, %v1067_v34 }
 0x3b5   : > { %v1072_v36 = vmul.f32 1.442695, %v1069_v35 }
 0x3b6   : > { %v1087_v37 = vpop.permute.xlu1 %1086 }
 0x3b7   : > { %2959 = vpow2.f32 %v1072_v36  ;;  %v1093_v38 = vsel %vm1091_vm4, %v1087_v37, 0 }
 0x3b8   : > { %2678 = vmatpush3.bf16.msra.mxu1 %v1093_v38 }
 0x3b9   : > { %2689 = vmatprep.subr.bf16.mxu1 %v3287_v3 }
 0x3ba   : > { %v1136_v39 = vpop.permute.xlu1 %1135 }
 0x3bb   : > { %v1141_v40 = vsel %vm1091_vm4, %v1136_v39, 0 }
 0x3bc   : > { %2684 = vmatpush3.bf16.msra.mxu0 %v1141_v40 }
 0x3bd   : > { %v2958_v41 = vpop.eup %2957  ;;  %2695 = vmatprep.subr.bf16.mxu0 %v3287_v3 }
 0x3be   : > { %v1074_v42 = vsel %vm966_vm3, %v2958_v41, 0.0  ;;  %v1186_v45 = vpop.permute.xlu1 %1185 }
 0x3bf   : > { %1075 = vadd.xlane.f32.xlu0 %v1074_v42  ;;  %v1191_v52 = vsel %vm966_vm3, %v1186_v45, 0 }
 0x3c1   : > { %v2960_v43 = vpop.eup %2959 }
 0x3c2   : > { %v1077_v44 = vsel %vm966_vm3, %v2960_v43, 0.0 }
 0x3c3   : > { %1078 = vadd.xlane.f32.xlu1 %v1077_v44 }
 0x3d4   : > { %1235 = vrot.lane.b32.xlu1 %v3800_v16, %s3291_s17 }
 0x3d5   : > { %1183 = vrot.lane.b32.xlu0 %v3797_v13, %s3292_s23 }
 0x3d8   : > { %1233 = vrot.lane.b32.xlu1 %v3800_v16, %s3292_s23  ;;  %s4181_s23 = sld [smem:[#allocation22_spill]] }
 0x3de   : > { %p2606_p4 = scmp.ne.s32.totalorder %s4181_s23, 1 }
 0x44c   : > { %v1076_v46 = vpop.xlane.xlu0 %1075 }
 0x44d   : > { %2961 = vrcp.f32 %v1076_v46 }
 0x450   : > { %v1079_v47 = vpop.xlane.xlu1 %1078  ;;  %v1184_v57 = vpop.permute.xlu0 %1183 }
 0x451   : > { %2963 = vrcp.f32 %v1079_v47 }
 0x454   : > { %v1236_v54 = vpop.permute.xlu1 %1235 }
 0x455   : > { %v1241_v56 = vsel %vm966_vm3, %v1236_v54, 0 }
 0x457   : > { %v2962_v48 = vpop.eup %2961 }
 0x458   : > { %v1082_v49 = vmul.f32 %v2962_v48, %v2958_v41  ;;  %v1234_v58 = vpop.permute.xlu1 %1233 }
 0x45a   : > { %v1084_v50 = vpack.c.bf16 %v1082_v49, %v1082_v49 }
 0x45b   : > { %v2964_v51 = vpop.eup %2963 }
 0x45c   : > { %v1083_v53 = vmul.f32 %v2964_v51, %v2960_v43  ;;  %2680 = vmatmul.mubr.msk.bf16.vlgmr.msra.gmra.mrb[4].mxu1 %vm966_vm3, %v1084_v50 }
 0x45d   : > { %2690 = vmatpush3.bf16.xpose.msra.mxu1 %v1191_v52  ;;  %2691 = vmatprep.mubr.msk.bf16.mxu1 %vm3288_vm1, %v3287_v3 }
 0x45e   : > { %v1085_v55 = vpack.c.bf16 %v1083_v53, %v1083_v53  ;;  %2701 = vmatprep.subr.bf16.mxu1 %v3287_v3 }
 0x460   : > { %2686 = vmatmul.mubr.msk.bf16.vlgmr.msra.gmra.mrb[8].mxu0 %vm966_vm3, %v1085_v55 }
 0x461   : > { %2696 = vmatpush3.bf16.xpose.msra.mxu0 %v1241_v56  ;;  %2697 = vmatprep.mubr.msk.bf16.mxu0 %vm3288_vm1, %v3287_v3 }
 0x462   : > { %2707 = vmatprep.subr.bf16.mxu0 %v3287_v3 }
 0x464   : > { %2692 = vmatmul.mubr.msk.bf16.vlgmr.msra.gmra.mrb[8].mxu1 %vm966_vm3, %v1184_v57 }
 0x465   : > { %2703 = vmatprep.mubr.msk.bf16.mxu1 %vm3288_vm1, %v3287_v3 }
 0x468   : > { %2698 = vmatmul.mubr.msk.bf16.vlgmr.msra.gmra.mrb[12].mxu0 %vm966_vm3, %v1234_v58 }
 0x469   : > { %2709 = vmatprep.mubr.msk.bf16.mxu0 %vm3288_vm1, %v3287_v3 }
 0x52f   : > { %v3845_v59 = vpop.f32.mrb[4].mxu1 }
 0x530   : > { %v2681_v60 = vpop.f32.mrb[5].mxu1 }
 0x531   : > { %v1132_v61 = vpop.f32.mrb[6].mxu1 }
 0x532   : > { %v2682_v62 = vpop.f32.mrb[7].mxu1 }
 0x533   : > { %v3847_v63 = vpop.f32.mrb[8].mxu0 }
 0x534   : > { %v2687_v0 = vpop.f32.mrb[9].mxu0 }
 0x535   : > { %v1180_v1 = vpop.f32.mrb[10].mxu0 }
 0x536   : > { %v2688_v2 = vpop.f32.mrb[11].mxu0 }
 0x537   : > { %v1227_v4 = vpop.f32.mrb[8].mxu1 }
 0x538   : > { %v2693_v7 = vpop.f32.mrb[9].mxu1  ;;  %v1283_v8 = vsel %vm966_vm3, %v1227_v4, -inf }
 0x539   : > { %1284 = vmax.xlane.f32.xlu1 %v1283_v8  ;;  %v1230_v9 = vpop.f32.mrb[10].mxu1 }
 0x53a   : > { %v2694_v10 = vpop.f32.mrb[11].mxu1 }
 0x53b   : > { %v1277_v11 = vpop.f32.mrb[12].mxu0 }
 0x53c   : > { %v2699_v12 = vpop.f32.mrb[13].mxu0  ;;  %v1286_v14 = vsel %vm966_vm3, %v1277_v11, -inf }
 0x53d   : > { %1287 = vmax.xlane.f32.xlu0 %v1286_v14  ;;  %v1280_v15 = vpop.f32.mrb[14].mxu0 }
 0x53e   : > { %v2700_v17 = vpop.f32.mrb[15].mxu0 }
 0x54a   : > { %1307 = vrot.lane.b32.xlu1 %v3797_v13, %s3293_s25 }
 0x54e   : > { %1405 = vrot.lane.b32.xlu1 %v3797_v13, %s3294_s18 }
 0x553   : > { %1355 = vrot.lane.b32.xlu0 %v3800_v16, %s3293_s25 }
 0x557   : > { %1403 = vrot.lane.b32.xlu0 %v3797_v13, %s3295_s4 }
 0x5c6   : > { %v1285_v18 = vpop.xlane.xlu1 %1284 }
 0x5c7   : > { %v1289_v19 = vsub.f32 %v1227_v4, %v1285_v18 }
 0x5c9   : > { %v1291_v20 = vmul.f32 1.442695, %v1289_v19 }
 0x5ca   : > { %v1308_v21 = vpop.permute.xlu1 %1307  ;;  %v1288_v22 = vpop.xlane.xlu0 %1287 }
 0x5cb   : > { %2965 = vpow2.f32 %v1291_v20  ;;  %v1313_v23 = vsel %vm1091_vm4, %v1308_v21, 0  ;;  %v1290_v24 = vsub.f32 %v1277_v11, %v1288_v22 }
 0x5cc   : > { %2702 = vmatpush3.bf16.msra.mxu1 %v1313_v23 }
 0x5cd   : > { %v1293_v25 = vmul.f32 1.442695, %v1290_v24  ;;  %2713 = vmatprep.subr.bf16.mxu1 %v3287_v3 }
 0x5ce   : > { %v1356_v26 = vpop.permute.xlu0 %1355  ;;  %v1406_v32 = vpop.permute.xlu1 %1405 }
 0x5cf   : > { %2967 = vpow2.f32 %v1293_v25  ;;  %v1361_v27 = vsel %vm1091_vm4, %v1356_v26, 0  ;;  %v1411_v39 = vsel %vm966_vm3, %v1406_v32, 0 }
 0x5d0   : > { %2708 = vmatpush3.bf16.msra.mxu0 %v1361_v27 }
 0x5d1   : > { %2719 = vmatprep.subr.bf16.mxu0 %v3287_v3 }
 0x5d2   : > { %v1404_v44 = vpop.permute.xlu0 %1403 }
 0x5d5   : > { %v2966_v28 = vpop.eup %2965 }
 0x5d6   : > { %v1295_v29 = vsel %vm966_vm3, %v2966_v28, 0.0 }
 0x5d7   : > { %1296 = vadd.xlane.f32.xlu1 %v1295_v29 }
 0x5d9   : > { %v2968_v30 = vpop.eup %2967 }
 0x5da   : > { %v1298_v31 = vsel %vm966_vm3, %v2968_v30, 0.0 }
 0x5db   : > { %1299 = vadd.xlane.f32.xlu1 %v1298_v31 }
 0x5ec   : > { %1455 = vrot.lane.b32.xlu1 %v3800_v16, %s3294_s18 }
 0x5f0   : > { %1453 = vrot.lane.b32.xlu1 %v3800_v16, %s3295_s4 }
 0x664   : > { %v1297_v33 = vpop.xlane.xlu1 %1296 }
 0x665   : > { %2969 = vrcp.f32 %v1297_v33 }
 0x668   : > { %v1300_v34 = vpop.xlane.xlu1 %1299 }
 0x669   : > { %2971 = vrcp.f32 %v1300_v34 }
 0x66c   : > { %v1456_v41 = vpop.permute.xlu1 %1455 }
 0x66d   : > { %v1461_v43 = vsel %vm966_vm3, %v1456_v41, 0 }
 0x66f   : > { %v2970_v35 = vpop.eup %2969 }
 0x670   : > { %v1303_v36 = vmul.f32 %v2970_v35, %v2966_v28  ;;  %v1454_v45 = vpop.permute.xlu1 %1453 }
 0x672   : > { %v1305_v37 = vpack.c.bf16 %v1303_v36, %v1303_v36 }
 0x673   : > { %v2972_v38 = vpop.eup %2971 }
 0x674   : > { %v1304_v40 = vmul.f32 %v2972_v38, %v2968_v30  ;;  %2704 = vmatmul.mubr.msk.bf16.vlgmr.msra.gmra.mrb[12].mxu1 %vm966_vm3, %v1305_v37 }
 0x675   : > { %2714 = vmatpush3.bf16.xpose.msra.mxu1 %v1411_v39  ;;  %2715 = vmatprep.mubr.msk.bf16.mxu1 %vm3288_vm1, %v3287_v3 }
 0x676   : > { %v1306_v42 = vpack.c.bf16 %v1304_v40, %v1304_v40  ;;  %2725 = vmatprep.subr.bf16.mxu1 %v3287_v3 }
 0x678   : > { %2710 = vmatmul.mubr.msk.bf16.vlgmr.msra.gmra.mrb[16].mxu0 %vm966_vm3, %v1306_v42 }
 0x679   : > { %2720 = vmatpush3.bf16.xpose.msra.mxu0 %v1461_v43  ;;  %2721 = vmatprep.mubr.msk.bf16.mxu0 %vm3288_vm1, %v3287_v3 }
 0x67a   : > { %2731 = vmatprep.subr.bf16.mxu0 %v3287_v3 }
 0x67c   : > { %2716 = vmatmul.mubr.msk.bf16.vlgmr.msra.gmra.mrb[16].mxu1 %vm966_vm3, %v1404_v44 }
 0x67d   : > { %2727 = vmatprep.mubr.msk.bf16.mxu1 %vm3288_vm1, %v3287_v3 }
 0x680   : > { %2722 = vmatmul.mubr.msk.bf16.vlgmr.msra.gmra.mrb[20].mxu0 %vm966_vm3, %v1454_v45 }
 0x681   : > { %2733 = vmatprep.mubr.msk.bf16.mxu0 %vm3288_vm1, %v3287_v3 }
 0x747   : > { %v3879_v46 = vpop.f32.mrb[12].mxu1 }
 0x748   : > { %v2705_v47 = vpop.f32.mrb[13].mxu1 }
 0x749   : > { %v1352_v48 = vpop.f32.mrb[14].mxu1 }
 0x74a   : > { %v2706_v49 = vpop.f32.mrb[15].mxu1 }
 0x74b   : > { %v3881_v50 = vpop.f32.mrb[16].mxu0 }
 0x74c   : > { %v2932_v51 = vpack.i.bf16 %v3881_v50, %v3879_v46  ;;  %v2711_v52 = vpop.f32.mrb[17].mxu0 }
 0x74d   : > { %v1400_v53 = vpop.f32.mrb[18].mxu0 }
 0x74e   : > { %v2712_v54 = vpop.f32.mrb[19].mxu0 }
 0x74f   : > { %v1447_v55 = vpop.f32.mrb[16].mxu1 }
 0x750   : > { %v2717_v56 = vpop.f32.mrb[17].mxu1  ;;  %v1503_v57 = vsel %vm966_vm3, %v1447_v55, -inf }
 0x751   : > { %1504 = vmax.xlane.f32.xlu0 %v1503_v57  ;;  %v1450_v58 = vpop.f32.mrb[18].mxu1 }
 0x752   : > { %v2718_v60 = vpop.f32.mrb[19].mxu1 }
 0x753   : > { %v1497_v61 = vpop.f32.mrb[20].mxu0 }
 0x754   : > { %v2723_v62 = vpop.f32.mrb[21].mxu0  ;;  %v1506_v0 = vsel %vm966_vm3, %v1497_v61, -inf }
 0x755   : > { %1507 = vmax.xlane.f32.xlu1 %v1506_v0  ;;  %v1500_v1 = vpop.f32.mrb[22].mxu0 }
 0x756   : > { %v2724_v2 = vpop.f32.mrb[23].mxu0 }
 0x766   : > { %1527 = vrot.lane.b32.xlu1 %v3797_v13, %s3296_s6 }
 0x76a   : > { %1625 = vrot.lane.b32.xlu1 %v3797_v13, %s3297_s5 }
 0x76e   : > { %1675 = vrot.lane.b32.xlu1 %v3800_v16, %s3297_s5 }
 0x772   : > { %1673 = vrot.lane.b32.xlu1 %v3800_v16, %s3298_s10 }
 0x7de   : > { %v1505_v4 = vpop.xlane.xlu0 %1504 }
 0x7df   : > { %v1509_v7 = vsub.f32 %v1447_v55, %v1505_v4 }
 0x7e1   : > { %v1511_v8 = vmul.f32 1.442695, %v1509_v7 }
 0x7e2   : > { %v1508_v9 = vpop.xlane.xlu1 %1507 }
 0x7e3   : > { %2973 = vpow2.f32 %v1511_v8  ;;  %v1510_v10 = vsub.f32 %v1497_v61, %v1508_v9 }
 0x7e5   : > { %v1513_v11 = vmul.f32 1.442695, %v1510_v10 }
 0x7e6   : > { %v1528_v12 = vpop.permute.xlu1 %1527 }
 0x7e7   : > { %2975 = vpow2.f32 %v1513_v11  ;;  %v1533_v14 = vsel %vm1091_vm4, %v1528_v12, 0 }
 0x7e8   : > { %2726 = vmatpush3.bf16.msra.mxu1 %v1533_v14 }
 0x7e9   : > { %2737 = vmatprep.subr.bf16.mxu1 %v3287_v3 }
 0x7ea   : > { %v1626_v25 = vpop.permute.xlu1 %1625 }
 0x7eb   : > { %v1631_v29 = vsel %vm966_vm3, %v1626_v25, 0 }
 0x7ed   : > { %v2974_v15 = vpop.eup %2973 }
 0x7ee   : > { %v1515_v17 = vsel %vm966_vm3, %v2974_v15, 0.0  ;;  %v1676_v31 = vpop.permute.xlu1 %1675 }
 0x7ef   : > { %1516 = vadd.xlane.f32.xlu0 %v1515_v17  ;;  %v1681_v33 = vsel %vm966_vm3, %v1676_v31, 0 }
 0x7f1   : > { %v2976_v18 = vpop.eup %2975 }
 0x7f2   : > { %v1518_v19 = vsel %vm966_vm3, %v2976_v18, 0.0  ;;  %v1674_v35 = vpop.permute.xlu1 %1673 }
 0x7f3   : > { %1519 = vadd.xlane.f32.xlu0 %v1518_v19  ;;  %v2950_v19 = vld [vmem:[%s3747_s8 + $0x8] sm:$0xff]  }
 0x809   : > { %1575 = vrot.lane.b32.xlu0 %v3800_v16, %s3296_s6 }
 0x80d   : > { %1623 = vrot.lane.b32.xlu0 %v3797_v13, %s3298_s10 }
 0x87c   : > { %v1517_v20 = vpop.xlane.xlu0 %1516 }
 0x87d   : > { %2977 = vrcp.f32 %v1517_v20 }
 0x880   : > { %v1520_v21 = vpop.xlane.xlu0 %1519 }
 0x881   : > { %2979 = vrcp.f32 %v1520_v21 }
 0x884   : > { %v1576_v22 = vpop.permute.xlu0 %1575 }
 0x885   : > { %v1581_v23 = vsel %vm1091_vm4, %v1576_v22, 0 }
 0x886   : > { %2732 = vmatpush3.bf16.msra.mxu0 %v1581_v23 }
 0x887   : > { %v2978_v24 = vpop.eup %2977  ;;  %2743 = vmatprep.subr.bf16.mxu0 %v3287_v3 }
 0x888   : > { %v1523_v26 = vmul.f32 %v2978_v24, %v2974_v15  ;;  %v1624_v34 = vpop.permute.xlu0 %1623 }
 0x88a   : > { %v1525_v27 = vpack.c.bf16 %v1523_v26, %v1523_v26 }
 0x88b   : > { %v2980_v28 = vpop.eup %2979 }
 0x88c   : > { %v1524_v30 = vmul.f32 %v2980_v28, %v2976_v18  ;;  %2728 = vmatmul.mubr.msk.bf16.vlgmr.msra.gmra.mrb[20].mxu1 %vm966_vm3, %v1525_v27  ;;  %v2949_v18 = vld [vmem:[%s3747_s8] sm:$0xff]  }
 0x88d   : > { %2738 = vmatpush3.bf16.xpose.msra.mxu1 %v1631_v29  ;;  %2739 = vmatprep.mubr.msk.bf16.mxu1 %vm3288_vm1, %v3287_v3 }
 0x88e   : > { %v1526_v32 = vpack.c.bf16 %v1524_v30, %v1524_v30  ;;  %2749 = vmatprep.subr.bf16.mxu1 %v3287_v3 }
 0x890   : > { %2734 = vmatmul.mubr.msk.bf16.vlgmr.msra.gmra.mrb[24].mxu0 %vm966_vm3, %v1526_v32 }
 0x891   : > { %2744 = vmatpush3.bf16.xpose.msra.mxu0 %v1681_v33  ;;  %2745 = vmatprep.mubr.msk.bf16.mxu0 %vm3288_vm1, %v3287_v3 }
 0x892   : > { %2755 = vmatprep.subr.bf16.mxu0 %v3287_v3 }
 0x894   : > { %2740 = vmatmul.mubr.msk.bf16.vlgmr.msra.gmra.mrb[24].mxu1 %vm966_vm3, %v1624_v34 }
 0x895   : > { %2751 = vmatprep.mubr.msk.bf16.mxu1 %vm3288_vm1, %v3287_v3 }
 0x898   : > { %2746 = vmatmul.mubr.msk.bf16.vlgmr.msra.gmra.mrb[28].mxu0 %vm966_vm3, %v1674_v35 }
 0x899   : > { %2757 = vmatprep.mubr.msk.bf16.mxu0 %vm3288_vm1, %v3287_v3 }
 0x95f   : > { %v1569_v36 = vpop.f32.mrb[20].mxu1 }
 0x960   : > { %v2729_v37 = vpop.f32.mrb[21].mxu1 }
 0x961   : > { %v1572_v38 = vpop.f32.mrb[22].mxu1 }
 0x962   : > { %v2730_v39 = vpop.f32.mrb[23].mxu1 }
 0x963   : > { %v1617_v40 = vpop.f32.mrb[24].mxu0 }
 0x964   : > { %v2937_v41 = vpack.i.bf16 %v1617_v40, %v1569_v36  ;;  %v2735_v42 = vpop.f32.mrb[25].mxu0 }
 0x965   : > { %v1620_v43 = vpop.f32.mrb[26].mxu0 }
 0x966   : > { %v2736_v44 = vpop.f32.mrb[27].mxu0 }
 0x967   : > { %v1667_v45 = vpop.f32.mrb[24].mxu1 }
 0x968   : > { %v2741_v47 = vpop.f32.mrb[25].mxu1  ;;  %v1723_v48 = vsel %vm966_vm3, %v1667_v45, -inf }
 0x969   : > { %1724 = vmax.xlane.f32.xlu0 %v1723_v48  ;;  %v1670_v49 = vpop.f32.mrb[26].mxu1 }
 0x96a   : > { %v2742_v52 = vpop.f32.mrb[27].mxu1 }
 0x96b   : > { %v1717_v53 = vpop.f32.mrb[28].mxu0 }
 0x96c   : > { %v2747_v54 = vpop.f32.mrb[29].mxu0  ;;  %v1726_v55 = vsel %vm966_vm3, %v1717_v53, -inf }
 0x96d   : > { %1727 = vmax.xlane.f32.xlu1 %v1726_v55  ;;  %v1720_v56 = vpop.f32.mrb[30].mxu0 }
 0x96e   : > { %v2748_v57 = vpop.f32.mrb[31].mxu0 }
 0x97e   : > { %1747 = vrot.lane.b32.xlu1 %v3797_v13, %s3299_s16 }
 0x982   : > { %2933 = vrot.lane.b32.xlu1 %v2932_v51, %s3300_s9 }
 0x986   : > { %2938 = vrot.lane.b32.xlu1 %v2937_v41, %s3301_s3 }
 0x9f6   : > { %v1725_v58 = vpop.xlane.xlu0 %1724 }
 0x9f7   : > { %v1729_v60 = vsub.f32 %v1667_v45, %v1725_v58 }
 0x9f9   : > { %v1731_v61 = vmul.f32 1.442695, %v1729_v60 }
 0x9fa   : > { %v1728_v62 = vpop.xlane.xlu1 %1727 }
 0x9fb   : > { %2981 = vpow2.f32 %v1731_v61  ;;  %v1730_v0 = vsub.f32 %v1717_v53, %v1728_v62 }
 0x9fd   : > { %v1733_v1 = vmul.f32 1.442695, %v1730_v0 }
 0x9fe   : > { %v1748_v2 = vpop.permute.xlu1 %1747 }
 0x9ff   : > { %2983 = vpow2.f32 %v1733_v1  ;;  %v1753_v4 = vsel %vm1091_vm4, %v1748_v2, 0 }
 0xa00   : > { %2750 = vmatpush3.bf16.msra.mxu1 %v1753_v4  ;;  %v2951_v4 = vld [vmem:[%s3756_s27] sm:$0xff]  }
 0xa01   : > { %2761 = vmatprep.subr.bf16.mxu1 %v3287_v3 }
 0xa02   : > { %v2934_v29 = vpop.permute.xlu1 %2933 }
 0xa03   : > { %v2936_v31 = vunpack.i.h.bf16 %v2934_v29  ;;  %v2935_v32 = vunpack.i.l.bf16 %v2934_v29 }
 0xa05   : > { %v2982_v13 = vpop.eup %2981  ;;  %v1868_v36 = vsel %vm966_vm3, %v3847_v63, %v2936_v31  ;;  %v1867_v37 = vsel %vm966_vm3, %v3845_v59, %v2935_v32  ;;  %v2588_v63 = vld [vmem:[%s4175_s0] ss:$0 sm:$0xff] }
 0xa06   : > { %v1735_v46 = vsel %vm966_vm3, %v2982_v13, 0.0  ;;  %v2939_v30 = vpop.permute.xlu1 %2938 }
 0xa07   : > { %1736 = vadd.xlane.f32.xlu0 %v1735_v46  ;;  %v2941_v33 = vunpack.i.h.bf16 %v2939_v30  ;;  %v2940_v34 = vunpack.i.l.bf16 %v2939_v30  ;;  %v2953_v46 = vld [vmem:[%s3765_s26] sm:$0xff]  }
 0xa09   : > { %v2984_v50 = vpop.eup %2983  ;;  %v1870_v40 = vsel %vm1869_vm5, %v1867_v37, %v2940_v34  ;;  %v1871_v41 = vsel %vm1869_vm5, %v1868_v36, %v2941_v33  ;;  %v2598_v36 = vld [vmem:[%s4179_s20] ss:$0 sm:$0xff] }
 0xa0a   : > { %v1738_v51 = vsel %vm966_vm3, %v2984_v50, 0.0 }
 0xa0b   : > { %1739 = vadd.xlane.f32.xlu0 %v1738_v51 }
 0xa21   : > { %1795 = vrot.lane.b32.xlu0 %v3800_v16, %s3299_s16 }
 0xa94   : > { %v1737_v7 = vpop.xlane.xlu0 %1736 }
 0xa95   : > { %2985 = vrcp.f32 %v1737_v7 }
 0xa98   : > { %v1740_v8 = vpop.xlane.xlu0 %1739 }
 0xa99   : > { %2987 = vrcp.f32 %v1740_v8 }
 0xa9c   : > { %v1796_v9 = vpop.permute.xlu0 %1795 }
 0xa9d   : > { %v1801_v10 = vsel %vm1091_vm4, %v1796_v9, 0 }
 0xa9e   : > { %2756 = vmatpush3.bf16.msra.mxu0 %v1801_v10 }
 0xa9f   : > { %v2986_v11 = vpop.eup %2985  ;;  %2769 = vmatprep.subr.bf16.mxu0 %v3287_v3 }
 0xaa0   : > { %v1743_v12 = vmul.f32 %v2986_v11, %v2982_v13  ;;  %v2952_v13 = vld [vmem:[%s3756_s27 + $0x8] sm:$0xff]  }
 0xaa2   : > { %v1745_v14 = vpack.c.bf16 %v1743_v12, %v1743_v12 }
 0xaa3   : > { %v2988_v15 = vpop.eup %2987 }
 0xaa4   : > { %v1744_v17 = vmul.f32 %v2988_v15, %v2984_v50  ;;  %2752 = vmatmul.mubr.msk.bf16.vlgmr.msra.gmra.mrb[28].mxu1 %vm966_vm3, %v1745_v14  ;;  %v2954_v50 = vld [vmem:[%s3765_s26 + $0x8] sm:$0xff]   ;;  %v2592_v14 = vld [vmem:[%s853_s29] ss:$0 sm:$0xff]  ;;  %s4178_s29 = scalar_lea.vmem [#allocation8], %s3714_s13 }
 0xaa5   : > { %2765 = vmatprep.mubr.msk.bf16.mxu1 %vm3288_vm1, %v3287_v3  ;;  %2762 = vmatpush3.bf16.msra.mxu1 %v2949_v18 }
 0xaa6   : > { %v1746_v16 = vpack.c.bf16 %v1744_v17, %v1744_v17  ;;  %2763 = vmatprep.subr.bf16.mxu1 %v3287_v3 }
 0xaa8   : > { %2758 = vmatmul.mubr.msk.bf16.vlgmr.msra.gmra.mrb[32].mxu0 %vm966_vm3, %v1746_v16 }
 0xaa9   : > { %2773 = vmatprep.mubr.msk.bf16.mxu0 %vm3288_vm1, %v3287_v3  ;;  %2764 = vmatpush3.bf16.msra.mxu1 %v2950_v19  ;;  %v2593_v19 = vld [vmem:[%s4177_s30] ss:$0 sm:$0xff] }
 0xaaa   : > { %2777 = vmatprep.subr.bf16.mxu1 %v3287_v3  ;;  %2770 = vmatpush3.bf16.msra.mxu0 %v2951_v4  ;;  %v2605_v4 = vld [vmem:[%s691_s12] ss:$0 sm:$0xff] }
 0xaab   : > { %2771 = vmatprep.subr.bf16.mxu0 %v3287_v3 }
 0xaae   : > { %2772 = vmatpush3.bf16.msra.mxu0 %v2952_v13 }
 0xb77   : > { %v1789_v20 = vpop.f32.mrb[28].mxu1 }
 0xb78   : > { %v2753_v21 = vpop.f32.mrb[29].mxu1 }
 0xb79   : > { %v1792_v22 = vpop.f32.mrb[30].mxu1 }
 0xb7a   : > { %v2754_v23 = vpop.f32.mrb[31].mxu1 }
 0xb7b   : > { %v1837_v24 = vpop.f32.mrb[32].mxu0 }
 0xb7c   : > { %v2942_v25 = vpack.i.bf16 %v1837_v24, %v1789_v20  ;;  %v2759_v26 = vpop.f32.mrb[33].mxu0  ;;  %v2955_v24 = vld [vmem:[%s3765_s26 + $0x10] sm:$0xff]  }
 0xb7d   : > { %v1840_v27 = vpop.f32.mrb[34].mxu0  ;;  %v2594_v26 = vld [vmem:[%s4178_s29] ss:$0 sm:$0xff] }
 0xb7e   : > { %2943 = vrot.lane.b32.xlu0 %v2942_v25, %s3302_s2  ;;  %v2760_v28 = vpop.f32.mrb[35].mxu0  ;;  %v2956_v25 = vld [vmem:[%s3765_s26 + $0x18] sm:$0xff]  }
 0xbf0   : > { %v2944_v35 = vpop.permute.xlu0 %2943 }
 0xbf1   : > { %v2946_v38 = vunpack.i.h.bf16 %v2944_v35  ;;  %v2945_v39 = vunpack.i.l.bf16 %v2944_v35 }
 0xbf3   : > { %v1874_v42 = vsel %vm1872_vm6, %v1871_v41, %v2946_v38  ;;  %v1873_v43 = vsel %vm1872_vm6, %v1870_v40, %v2945_v39 }
 0xbf4   : > { %v1875_v44 = vpack.c.bf16 %v1874_v42, %v1873_v43 }
 0xbf6   : > { %2766 = vmatmul.mubr.msk.bf16.vlgmr.msra.gmra.mrb[32].mxu1 %vm916_vm2, %v1875_v44 }
 0xbf7   : > { %2785 = vmatprep.mubr.msk.bf16.mxu1 %vm3288_vm1, %v3287_v3  ;;  %2778 = vmatpush3.bf16.msra.mxu1 %v2953_v46 }
 0xbf8   : > { %2779 = vmatprep.subr.bf16.mxu1 %v3287_v3 }
 0xbfb   : > { %2780 = vmatpush3.bf16.msra.mxu1 %v2954_v50 }
 0xbfc   : > { %2781 = vmatprep.subr.bf16.mxu1 %v3287_v3 }
 0xbff   : > { %2782 = vmatpush3.bf16.msra.mxu1 %v2955_v24 }
 0xc00   : > { %2783 = vmatprep.subr.bf16.mxu1 %v3287_v3 }
 0xc03   : > { %2784 = vmatpush3.bf16.msra.mxu1 %v2956_v25 }
 0xcc9   : > { %v1936_v45 = vpop.f32.mrb[32].mxu1 }
 0xcca   : > { %v1937_v47 = vadd.f32 %v2588_v63, %v1936_v45  ;;  %v2767_v59 = vpop.f32.mrb[33].mxu1 }
 0xccb   : > { %v1939_v48 = vpop.f32.mrb[34].mxu1 }
 0xccc   : > { %v1940_v49 = vadd.f32 %v2588_v63, %v1939_v48  ;;  %v2768_v52 = vpop.f32.mrb[35].mxu1  ;;  %v1943_v53 = vadd.f32 %v1937_v47, %v3779_v5 }
 0xcce   : > { %v1947_v54 = vsel %vm916_vm2, %v1943_v53, 0.0  ;;  %v1944_v55 = vadd.f32 %v1940_v49, %v3781_v6 }
 0xccf   : > { %1948 = vadd.xlane.f32.xlu1 %v1947_v54 }
 0xcd0   : > { %v1950_v56 = vsel %vm916_vm2, %v1944_v55, 0.0 }
 0xcd1   : > { %1951 = vadd.xlane.f32.xlu0 %v1950_v56 }
 0xd5c   : > { %v1949_v57 = vpop.xlane.xlu1 %1948 }
 0xd5d   : > { %v1954_v58 = vmul.f32 0.03125, %v1949_v57 }
 0xd5e   : > { %v1952_v60 = vpop.xlane.xlu0 %1951 }
 0xd5f   : > { %v1956_v61 = vsub.f32 %v1943_v53, %v1954_v58  ;;  %v1955_v62 = vmul.f32 0.03125, %v1952_v60 }
 0xd61   : > { %v1957_v0 = vsub.f32 %v1944_v55, %v1955_v62  ;;  %v1958_v1 = vmul.f32 %v1956_v61, %v1956_v61 }
 0xd63   : > { %v1960_v5 = vsel %vm916_vm2, %v1958_v1, 0.0  ;;  %v1959_v2 = vmul.f32 %v1957_v0, %v1957_v0 }
 0xd64   : > { %1961 = vadd.xlane.f32.xlu0 %v1960_v5  ;;  %v2604_v5 = vld [vmem:[%s878_s11] ss:$0 sm:$0xff] }
 0xd65   : > { %v1963_v6 = vsel %vm916_vm2, %v1959_v2, 0.0 }
 0xd66   : > { %1964 = vadd.xlane.f32.xlu1 %v1963_v6 }
 0xdf1   : > { %v1962_v51 = vpop.xlane.xlu0 %1961 }
 0xdf2   : > { %v1966_v7 = vmul.f32 0.03125, %v1962_v51 }
 0xdf3   : > { %v1965_v8 = vpop.xlane.xlu1 %1964 }
 0xdf4   : > { %v1968_v9 = vadd.f32 1e-05, %v1966_v7  ;;  %v1967_v10 = vmul.f32 0.03125, %v1965_v8 }
 0xdf6   : > { %2989 = vrsqrt.f32 %v1968_v9  ;;  %v1969_v11 = vadd.f32 1e-05, %v1967_v10 }
 0xdf8   : > { %2991 = vrsqrt.f32 %v1969_v11 }
 0xe00   : > { %v2990_v12 = vpop.eup %2989 }
 0xe01   : > { %v1972_v15 = vmul.f32 %v2990_v12, %v1956_v61 }
 0xe02   : > { %v2992_v17 = vpop.eup %2991 }
 0xe03   : > { %v1980_v16 = vmul.f32 %v2592_v14, %v1972_v15  ;;  %v1973_v18 = vmul.f32 %v2992_v17, %v1957_v0 }
 0xe05   : > { %v1981_v20 = vmul.f32 %v2592_v14, %v1973_v18  ;;  %v1988_v21 = vadd.f32 %v2593_v19, %v1980_v16 }
 0xe07   : > { %v1989_v22 = vadd.f32 %v2593_v19, %v1981_v20 }
 0xe09   : > { %v1990_v23 = vpack.c.bf16 %v1989_v22, %v1988_v21 }
 0xe0b   : > { %2774 = vmatmul.mubr.msk.bf16.vlgmr.msra.gmra.mrb[36].mxu0 %vm916_vm2, %v1990_v23 }
 0xede   : > { %v2051_v27 = vpop.f32.mrb[36].mxu0 }
 0xedf   : > { %v2052_v28 = vadd.f32 %v2594_v26, %v2051_v27  ;;  %v2775_v29 = vpop.f32.mrb[37].mxu0 }
 0xee0   : > { %v2054_v30 = vpop.f32.mrb[38].mxu0 }
 0xee1   : > { %v2055_v31 = vadd.f32 %v2594_v26, %v2054_v30  ;;  %v2776_v32 = vpop.f32.mrb[39].mxu0  ;;  %v2058_v33 = vmax.f32 %v2052_v28, 0.0 }
 0xee3   : > { %v2059_v34 = vmax.f32 %v2055_v31, 0.0 }
 0xee5   : > { %v2060_v35 = vpack.c.bf16 %v2059_v34, %v2058_v33 }
 0xee7   : > { %2786 = vmatmul.mubr.msk.bf16.vlgmr.msra.gmra.mrb[36].mxu1 %vm2100_vm7, %v2060_v35 }
 0xfba   : > { %v2138_v37 = vpop.f32.mrb[36].mxu1 }
 0xfbb   : > { %v2139_v38 = vadd.f32 %v2598_v36, %v2138_v37  ;;  %v2787_v3 = vpop.f32.mrb[37].mxu1 }
 0xfbc   : > { %v2141_v39 = vpop.f32.mrb[38].mxu1 }
 0xfbd   : > { %v2142_v40 = vadd.f32 %v2598_v36, %v2141_v39  ;;  %v2788_v41 = vpop.f32.mrb[39].mxu1  ;;  %v2145_v42 = vadd.f32 %v2139_v38, %v1988_v21 }
 0xfbf   : > { %v2149_v43 = vsel %vm916_vm2, %v2145_v42, 0.0  ;;  %v2146_v44 = vadd.f32 %v2142_v40, %v1989_v22 }
 0xfc0   : > { %2150 = vadd.xlane.f32.xlu0 %v2149_v43 }
 0xfc1   : > { %v2152_v63 = vsel %vm916_vm2, %v2146_v44, 0.0 }
 0xfc2   : > { %2153 = vadd.xlane.f32.xlu1 %v2152_v63 }
0x104d   : > { %v2151_v45 = vpop.xlane.xlu0 %2150 }
0x104e   : > { %v2155_v47 = vmul.f32 0.03125, %v2151_v45 }
0x104f   : > { %v2154_v59 = vpop.xlane.xlu1 %2153 }
0x1050   : > { %v2157_v48 = vsub.f32 %v2145_v42, %v2155_v47  ;;  %v2156_v49 = vmul.f32 0.03125, %v2154_v59 }
0x1052   : > { %v2158_v52 = vsub.f32 %v2146_v44, %v2156_v49  ;;  %v2159_v53 = vmul.f32 %v2157_v48, %v2157_v48 }
0x1054   : > { %v2161_v54 = vsel %vm916_vm2, %v2159_v53, 0.0  ;;  %v2160_v55 = vmul.f32 %v2158_v52, %v2158_v52 }
0x1055   : > { %2162 = vadd.xlane.f32.xlu0 %v2161_v54 }
0x1056   : > { %v2164_v56 = vsel %vm916_vm2, %v2160_v55, 0.0 }
0x1057   : > { %2165 = vadd.xlane.f32.xlu1 %v2164_v56 }
0x10e2   : > { %v2163_v57 = vpop.xlane.xlu0 %2162 }
0x10e3   : > { %v2167_v58 = vmul.f32 0.03125, %v2163_v57 }
0x10e4   : > { %v2166_v60 = vpop.xlane.xlu1 %2165 }
0x10e5   : > { %v2169_v61 = vadd.f32 1e-05, %v2167_v58  ;;  %v2168_v62 = vmul.f32 0.03125, %v2166_v60 }
0x10e7   : > { %2993 = vrsqrt.f32 %v2169_v61  ;;  %v2170_v0 = vadd.f32 1e-05, %v2168_v62 }
0x10e9   : > { %2995 = vrsqrt.f32 %v2170_v0 }
0x10f1   : > { %v2994_v1 = vpop.eup %2993 }
0x10f2   : > { %v2173_v2 = vmul.f32 %v2994_v1, %v2157_v48 }
0x10f3   : > { %v2996_v6 = vpop.eup %2995 }
0x10f4   : > { %v2181_v13 = vmul.f32 %v2604_v5, %v2173_v2  ;;  %v2174_v46 = vmul.f32 %v2996_v6, %v2158_v52  ;;  %2196 = sbr.rel (%p2606_p4) target bundleno = 4355 (0x1103), region = 100 }
0x10f6   : > { %v2189_v50 = vadd.f32 %v2605_v4, %v2181_v13  ;;  %v2182_v51 = vmul.f32 %v2604_v5, %v2174_v46 }
0x10f8   : > { %2191 = vst.msk [vmem:[#allocation2] sm:$0xff] %vm916_vm2, %v2189_v50  ;;  %v2190_v7 = vadd.f32 %v2605_v4, %v2182_v51 }
0x10fa   : > { %2192 = vst.msk [vmem:[#allocation2 + $0x8] sm:$0xff] %vm916_vm2, %v2190_v7 }
0x10ff   : > { %v2197_v8 = vld [vmem:[#allocation2] sm:$0xff] }
0x1100   : > { %2199 = vst.msk [vmem:[%s3770_s14] sm:$0xff] %vm916_vm2, %v2197_v8 }
0x1101   : > { %v2198_v9 = vld [vmem:[#allocation2 + $0x8] sm:$0xff] }
0x1102   : > { %2200 = vst.msk [vmem:[%s3770_s14 + $0x8] sm:$0xff] %vm916_vm2, %v2198_v9 }
0x1103 PF: > { %s4182_s13 = sld [smem:[#allocation30_spill]]  ;;  %s2608_s22 = sshll.u32 %s3265_s15, 7 }
0x1104   : > { %s4183_s25 = sld [smem:[#allocation45_spill]]  ;;  %s2217_s6 = sshll.u32 %s3770_s14, 4  ;;  %s4004_s6 = int_to_ptr.vmem [resolvable:$true] %s2217_s6 }
0x1105   : > { %s2202_s5 = scalar_lea.sflag [#allocation5], %s3700_s28  ;;  %s3147_s10 = scalar_lea.vmem %s4004_s6, 256 }
0x1106   : > { %p3148_p12 = scmp.ne.s32.totalorder %s4004_s6, %s3147_s10  ;;  %s3303_s16 = smov [#allocation12]  }
0x1107   : > { %s3151_s3 = sshll.u32 %s3303_s16, 4  ;;  %s3152_s3 = int_to_ptr.vmem [resolvable:$false] %s3151_s3 }
0x1108   : > { %s3153_s15 = scalar_lea.vmem %s3152_s3, 512  ;;  %p3154_p7 = scmp.lt.s32.totalorder %s4004_s6, %s3152_s3 }
0x1109   : > { %p4185_p3 = scmp.ne.s32.totalorder %s4182_s13, 0  ;;  %p3155_p1 = scmp.lt.s32.totalorder %s3153_s15, %s3147_s10 }
0x110a   : > { %s4184_s4 = smov %s4183_s25  ;;  %s4001_s18 = scalar_lea.hbm %s4183_s25, %s2608_s22 }
0x110b   : > { %p3149_p5 = pnand %p3148_p12, %p4185_p3  ;;  %p3156_p9 = por %p3155_p1, %p3154_p7 }
0x110d   : > { %p3150_p6 = pneg %p3149_p5 }
0x110f   : > { %p3157_p13 = pnand %p3156_p9, %p3150_p6 }
0x1111   : > { %3160 = shalt.err (!%p3157_p13)
}
0x1112   : > { %s3161_s14 = scalar_lea.hbm %s4001_s18, 256  ;;  %s3165_s1 = scalar_lea.hbm %s4184_s4, 512 }
0x1113   : > { %p3162_p0 = scmp.ne.s32.totalorder %s4001_s18, %s3161_s14  ;;  %p3166_p2 = scmp.lt.u32.totalorder %s4001_s18, %s4184_s4 }
0x1114   : > { %p3167_p8 = scmp.lt.u32.totalorder %s3165_s1, %s3161_s14  ;;  %p3169_p12 = scmp.lt.u32.totalorder %s3161_s14, %s4001_s18 }
0x1115   : > { %p3163_p10 = pnand %p3162_p0, %p4185_p3 }
0x1116   : > { %p3168_p4 = por %p3167_p8, %p3166_p2 }
0x1117   : > { %p3164_p11 = pneg %p3163_p10 }
0x1118   : > { %p3170_p5 = por %p3169_p12, %p3168_p4 }
0x111a   : > { %p3171_p6 = pnand %p3170_p5, %p3164_p11 }
0x111c   : > { %3174 = shalt.err (!%p3171_p6)
}
0x111d   : > { %s3304_s27 = smov 128   ;;  %s3305_s19 = smov 256  }
0x111e   : > { %2799 = dma.vmem_to_hbm [thread:$0]  (%p4185_p3), %s4004_s6, 256, %s4001_s18, %s2202_s5, %s3304_s27, %s3305_s19, %s3300_s9  }
0x111f PF: > { %s4186_s24 = sld [smem:[#allocation25_spill]]  ;;  %s4187_s30 = sld [smem:[#allocation19_spill]] }
0x1120   : > { %s4188_s29 = sld [smem:[#allocation31_spill]] }
0x1125   : > { %p2822_p7 = scmp.ge.s32.totalorder %s4186_s24, 2  ;;  %s2232_s20 = sand.u32 1, %s4187_s30  }
0x1126   : > { %p4189_p1 = scmp.ne.s32.totalorder %s4188_s29, 0  ;;  %s2233_s26 = scalar_lea.sflag [#allocation5], %s2232_s20 }
0x1128   : > { %p2818_p9 = pnand %p2822_p7, %p4189_p1 }
0x112a   : > { %3232 = dma.done.wait (!%p2818_p9), %s2233_s26, 256  }
0x112b   : > { %3234 = vsyncadd (!%p2818_p9), %s2233_s26, 4294967040  ;;  %s35_s18 = sadd.s32 1, %s4186_s24   ;;  %s4190_s25 = sld [smem:[#allocation17_spill]] }
0x112c   : > { %p32_p13 = scmp.ge.s32.totalorder %s35_s18, 6   ;;  %s4191_s26 = sld [smem:[#allocation18_spill]] }
0x112d   : > { %s4192_s27 = sld [smem:[#allocation29_spill]]  ;;  %s4193_s28 = sld [smem:[#allocation20_spill]] }
0x112e   : > { %s4194_s29 = sld [smem:[#allocation21_spill]]  ;;  %s4195_s30 = sld [smem:[#allocation28_spill]] }
0x112f   : > { %s4196_s14 = sld [smem:[#allocation23_spill]]  ;;  %s4197_s15 = sld [smem:[#allocation24_spill]] }
0x1130   : > { %s4198_s16 = sld [smem:[#allocation26_spill]]  ;;  %s4199_s17 = sld [smem:[#allocation27_spill]] }
0x1131   :  { %34 = sbr.rel (!%p32_p13) target bundleno = 28 (0x1c), region = 197 }
0x1138   :  { %2238 = vsyncpa [#allocation4], 1 }
0x1139   :  { %2240 = vsyncpa [#allocation4 + $0x1], 1 }
0x113a   :  { %2241 = vsyncpa [#allocation7], 1 }
0x113b   :  { %2243 = vsyncpa [#allocation7 + $0x1], 1 }
0x113c   :  { %2244 = vsyncpa [#allocation10], 1 }
0x113d   :  { %2246 = vsyncpa [#allocation10 + $0x1], 1 }
0x113e   :  { %2247 = vsyncpa [#allocation5], 1 }
0x113f   :  { %2249 = vsyncpa [#allocation5 + $0x1], 1 }

</bundles_post_ra>
